<compile_context>
chip_gen: v5e
topology: v5e:2x2
jax: 0.10.0
libtpu: 0.0.40
codegen_flags: <defaults>
</compile_context>

<pallas_src>
import math
import functools

import jax
import jax.numpy as jnp
from jax.experimental import pallas as pl
from jax.experimental.pallas import tpu as pltpu


def _round_up(x, m):
    return (x + m - 1) // m * m


# --------------------------------------------------------------------------------------
# Fused Pallas kernel: PE add -> nlayers x TransformerEncoderLayer -> decoder linear
# --------------------------------------------------------------------------------------

def _fused_transformer_kernel(x_ref, pe_ref, mask_ref,
                              in_w_ref, in_b_ref, out_w_ref, out_b_ref,
                              ln1_g_ref, ln1_b_ref,
                              lin1_w_ref, lin1_b_ref, lin2_w_ref, lin2_b_ref,
                              ln2_g_ref, ln2_b_ref,
                              dec_w_ref, dec_b_ref,
                              o_ref, *, nhead, nlayers, eps):
    """One invocation = whole batch, whole model.

    x_ref:   [R, D]   embedded tokens (already scaled by sqrt(D)), R = S*B, seq-major rows
    pe_ref:  [R, D]   positional encoding per row
    mask_ref:[R, R]   additive mask (causal within a batch element, -inf across elements)
    per-layer weights are stacked along a leading `nlayers` axis.
    o_ref:   [R, Np]  logits, Np = ntoken rounded up to a multiple of 128 lanes.
    """
    x = x_ref[...].astype(jnp.float32) + pe_ref[...]                     # [R, D]
    R, D = x.shape
    Hd = D // nhead
    scale = 1.0 / math.sqrt(Hd)
    mask = mask_ref[...]                                                 # [R, R]

    for l in range(nlayers):                                             # static unroll
        # ---- self-attention: QKV projection for all heads / all rows at once ----
        qkv = jnp.dot(x, in_w_ref[l],
                      preferred_element_type=jnp.float32) + in_b_ref[l]  # [R, 3D]

        heads = []
        for h in range(nhead):                                           # static unroll
            q = qkv[:, h * Hd:(h + 1) * Hd]                              # [R, Hd]
            k = qkv[:, D + h * Hd:D + (h + 1) * Hd]                      # [R, Hd]
            v = qkv[:, 2 * D + h * Hd:2 * D + (h + 1) * Hd]              # [R, Hd]
            s = jax.lax.dot_general(q, k, (((1,), (1,)), ((), ())),
                                    preferred_element_type=jnp.float32) * scale
            s = s + mask                                                 # [R, R]
            m = jnp.max(s, axis=-1, keepdims=True)
            p = jnp.exp(s - m)
            # Every row has a finite diagonal entry, so the sum is > 0.
            p = p * pl.reciprocal(jnp.sum(p, axis=-1, keepdims=True), approx=True)
            heads.append(jnp.dot(p, v, preferred_element_type=jnp.float32))

        # Merge heads by concatenation, then a single out-projection matmul.
        attn = jnp.concatenate(heads, axis=-1)                           # [R, D]
        attn = jnp.dot(attn, out_w_ref[l],
                       preferred_element_type=jnp.float32) + out_b_ref[l]

        # ---- add & LayerNorm 1 (post-norm) ----
        z = x + attn
        mu = jnp.mean(z, axis=-1, keepdims=True)
        var = jnp.mean((z - mu) ** 2, axis=-1, keepdims=True)
        x1 = (z - mu) * jax.lax.rsqrt(var + eps) * ln1_g_ref[l] + ln1_b_ref[l]

        # ---- feed-forward (relu), dropout = identity in eval ----
        h1 = jnp.dot(x1, lin1_w_ref[l],
                     preferred_element_type=jnp.float32) + lin1_b_ref[l]
        h1 = jnp.maximum(h1, 0.0)
        h2 = jnp.dot(h1, lin2_w_ref[l],
                     preferred_element_type=jnp.float32) + lin2_b_ref[l]

        # ---- add & LayerNorm 2 ----
        z2 = x1 + h2
        mu2 = jnp.mean(z2, axis=-1, keepdims=True)
        var2 = jnp.mean((z2 - mu2) ** 2, axis=-1, keepdims=True)
        x = (z2 - mu2) * jax.lax.rsqrt(var2 + eps) * ln2_g_ref[l] + ln2_b_ref[l]

    # ---- decoder (vocab) linear; output is lane-padded -> unmasked stores ----
    logits = jnp.dot(x, dec_w_ref[...],
                     preferred_element_type=jnp.float32) + dec_b_ref[...]
    o_ref[...] = logits.astype(o_ref.dtype)


# --------------------------------------------------------------------------------------
# Model glue: parameter init + forward orchestration
# --------------------------------------------------------------------------------------

def make_positional_encoding(d_model, max_len=5000):
    position = jnp.arange(max_len, dtype=jnp.float32)[:, None]
    div_term = jnp.exp(
        jnp.arange(0, d_model, 2, dtype=jnp.float32) * (-math.log(10000.0) / d_model)
    )
    pe = jnp.zeros((max_len, 1, d_model), dtype=jnp.float32)
    pe = pe.at[:, 0, 0::2].set(jnp.sin(position * div_term))
    pe = pe.at[:, 0, 1::2].set(jnp.cos(position * div_term))
    return pe


def init_params(key, ntoken, d_model, nhead, d_hid, nlayers):
    n_pad = _round_up(ntoken, 128)
    keys = iter(jax.random.split(key, 2 + 8 * nlayers))

    def unif(k, shape, s):
        return jax.random.uniform(k, shape, jnp.float32, -s, s)

    # Embedding table pre-scaled by sqrt(d_model): folds `x * sqrt(D)` into the gather.
    emb = unif(next(keys), (ntoken, d_model), 0.1) * math.sqrt(d_model)

    # Decoder weight/bias zero-padded to a 128-lane multiple (lane-dense logit stores).
    dec_w = jnp.zeros((d_model, n_pad), jnp.float32)
    dec_w = dec_w.at[:, :ntoken].set(unif(next(keys), (d_model, ntoken), 0.1))
    dec_b = jnp.zeros((1, n_pad), jnp.float32)            # decoder bias starts at zero

    attn_s = 1.0 / math.sqrt(d_model)
    ffn_s = 1.0 / math.sqrt(d_hid)
    acc = {k: [] for k in ("in_proj_w", "in_proj_b", "out_proj_w", "out_proj_b",
                           "lin1_w", "lin1_b", "lin2_w", "lin2_b",
                           "ln1_g", "ln1_b", "ln2_g", "ln2_b")}
    for _ in range(nlayers):
        acc["in_proj_w"].append(unif(next(keys), (d_model, 3 * d_model), attn_s))
        acc["in_proj_b"].append(unif(next(keys), (1, 3 * d_model), attn_s))
        acc["out_proj_w"].append(unif(next(keys), (d_model, d_model), attn_s))
        acc["out_proj_b"].append(unif(next(keys), (1, d_model), attn_s))
        acc["lin1_w"].append(unif(next(keys), (d_model, d_hid), attn_s))
        acc["lin1_b"].append(unif(next(keys), (1, d_hid), attn_s))
        acc["lin2_w"].append(unif(next(keys), (d_hid, d_model), ffn_s))
        acc["lin2_b"].append(unif(next(keys), (1, d_model), ffn_s))
        acc["ln1_g"].append(jnp.ones((1, d_model), jnp.float32))
        acc["ln1_b"].append(jnp.zeros((1, d_model), jnp.float32))
        acc["ln2_g"].append(jnp.ones((1, d_model), jnp.float32))
        acc["ln2_b"].append(jnp.zeros((1, d_model), jnp.float32))

    params = {"d_model": d_model, "nhead": nhead, "nlayers": nlayers, "ntoken": ntoken,
              "emb": emb, "pe": make_positional_encoding(d_model),
              "dec_w": dec_w, "dec_b": dec_b}
    params.update({k: jnp.stack(v) for k, v in acc.items()})  # [nlayers, ...] stacks
    return params


def transformer_forward(params, src, src_mask):
    """src: [S, B] int32; src_mask: [S, S] float additive mask -> [S, B, ntoken]."""
    S, B = src.shape
    D = params["d_model"]
    ntoken = params["ntoken"]
    Np = params["dec_w"].shape[1]
    R = S * B

    # Embedding gather (pre-scaled table), already in the kernel's seq-major row order
    # r = s*B + b; the reshape is free.  (Data-dependent gather stays in XLA glue.)
    x = params["emb"][src].reshape(R, D)

    # Positional-encoding rows, one per activation row (tiny: R x D).
    pe = jnp.repeat(params["pe"][:S, 0, :], B, axis=0)

    # Interleaved whole-batch attention mask: entry [(s,b),(t,b')] = src_mask[s,t]
    # if b == b' else -inf, so one [R,R] softmax per head handles every batch element.
    s_of = jnp.repeat(jnp.arange(S), B)
    b_of = jnp.tile(jnp.arange(B), S)
    big_mask = jnp.where(b_of[:, None] == b_of[None, :],
                         src_mask[s_of[:, None], s_of[None, :]],
                         -jnp.inf).astype(jnp.float32)

    kernel = functools.partial(_fused_transformer_kernel,
                               nhead=params["nhead"], nlayers=params["nlayers"],
                               eps=1e-5)
    out = pl.pallas_call(
        kernel,
        out_shape=jax.ShapeDtypeStruct((R, Np), jnp.float32),
        # No grid: single fused step — the whole model + activations is VMEM-resident,
        # so there is no per-step overhead and no HBM activation traffic between stages.
        compiler_params=pltpu.CompilerParams(vmem_limit_bytes=32 * 1024 * 1024),
    )(x, pe, big_mask,
      params["in_proj_w"], params["in_proj_b"],
      params["out_proj_w"], params["out_proj_b"],
      params["ln1_g"], params["ln1_b"],
      params["lin1_w"], params["lin1_b"],
      params["lin2_w"], params["lin2_b"],
      params["ln2_g"], params["ln2_b"],
      params["dec_w"], params["dec_b"])

    # Rows are already seq-major -> free reshape; drop the lane-padding columns.
    return out.reshape(S, B, Np)[:, :, :ntoken]


def generate_square_subsequent_mask(sz):
    i = jnp.arange(sz)[:, None]
    j = jnp.arange(sz)[None, :]
    return jnp.where(j <= i, 0.0, -jnp.inf).astype(jnp.float32)


# --------------------------------------------------------------------------------------
# Main
# --------------------------------------------------------------------------------------

if __name__ == "__main__":
    # Small, forward-consistent shapes (matches the tutorial hyperparameters).
    ntoken, d_model, nhead, d_hid, nlayers = 64, 32, 2, 200, 2
    seq_len, batch = 8, 2

    key = jax.random.PRNGKey(0)
    k_params, k_src = jax.random.split(key)

    params = init_params(k_params, ntoken, d_model, nhead, d_hid, nlayers)
    src = jax.random.randint(k_src, (seq_len, batch), 0, ntoken, dtype=jnp.int32)
    src_mask = generate_square_subsequent_mask(seq_len)

    fwd = jax.jit(functools.partial(transformer_forward, params))
    out = jax.block_until_ready(fwd(src, src_mask))

    assert out.shape == (seq_len, batch, ntoken), out.shape
    assert bool(jnp.all(jnp.isfinite(out))), "non-finite output"
    print("KERNEL_OK")
</pallas_src>

<mosaic_0001>
module attributes {stable_mosaic.version = 11 : i64} {
  func.func @_fused_transformer_kernel(%arg0: memref<16x32xf32, #tpu.memory_space<vmem>>, %arg1: memref<16x32xf32, #tpu.memory_space<vmem>>, %arg2: memref<16x16xf32, #tpu.memory_space<vmem>>, %arg3: memref<2x32x96xf32, #tpu.memory_space<vmem>>, %arg4: memref<2x1x96xf32, #tpu.memory_space<vmem>>, %arg5: memref<2x32x32xf32, #tpu.memory_space<vmem>>, %arg6: memref<2x1x32xf32, #tpu.memory_space<vmem>>, %arg7: memref<2x1x32xf32, #tpu.memory_space<vmem>>, %arg8: memref<2x1x32xf32, #tpu.memory_space<vmem>>, %arg9: memref<2x32x200xf32, #tpu.memory_space<vmem>>, %arg10: memref<2x1x200xf32, #tpu.memory_space<vmem>>, %arg11: memref<2x200x32xf32, #tpu.memory_space<vmem>>, %arg12: memref<2x1x32xf32, #tpu.memory_space<vmem>>, %arg13: memref<2x1x32xf32, #tpu.memory_space<vmem>>, %arg14: memref<2x1x32xf32, #tpu.memory_space<vmem>>, %arg15: memref<32x128xf32, #tpu.memory_space<vmem>>, %arg16: memref<1x128xf32, #tpu.memory_space<vmem>>, %arg17: memref<16x128xf32, #tpu.memory_space<vmem>>) attributes {dimension_semantics = [], scalar_prefetch = 0 : i64, scratch_operands = 0 : i64, tpu.core_type = #tpu.core_type<tc>} {
    %c0 = arith.constant 0 : index
    %c0_0 = arith.constant 0 : index
    %0 = vector.load %arg0[%c0, %c0_0] : memref<16x32xf32, #tpu.memory_space<vmem>>, vector<16x32xf32>
    %c0_1 = arith.constant 0 : index
    %c0_2 = arith.constant 0 : index
    %1 = vector.load %arg1[%c0_1, %c0_2] : memref<16x32xf32, #tpu.memory_space<vmem>>, vector<16x32xf32>
    %2 = arith.addf %0, %1 : vector<16x32xf32>
    %c0_3 = arith.constant 0 : index
    %c0_4 = arith.constant 0 : index
    %3 = vector.load %arg2[%c0_3, %c0_4] : memref<16x16xf32, #tpu.memory_space<vmem>>, vector<16x16xf32>
    %c0_5 = arith.constant 0 : index
    %c0_6 = arith.constant 0 : index
    %c0_7 = arith.constant 0 : index
    %4 = vector.load %arg3[%c0_5, %c0_6, %c0_7] : memref<2x32x96xf32, #tpu.memory_space<vmem>>, vector<1x32x96xf32>
    %5 = vector.shape_cast %4 : vector<1x32x96xf32> to vector<32x96xf32>
    %cst = arith.constant dense<0.000000e+00> : vector<16x96xf32>
    %6 = tpu.matmul %2, %5, %cst {dimension_numbers = #tpu.dot_dimension_numbers<[1], [0], [0], [1], [0, 0, 1, 1], [], []>} : vector<16x32xf32>, vector<32x96xf32>, vector<16x96xf32> -> vector<16x96xf32>
    %c0_8 = arith.constant 0 : index
    %c0_9 = arith.constant 0 : index
    %c0_10 = arith.constant 0 : index
    %7 = vector.load %arg4[%c0_8, %c0_9, %c0_10] : memref<2x1x96xf32, #tpu.memory_space<vmem>>, vector<1x1x96xf32>
    %8 = vector.shape_cast %7 : vector<1x1x96xf32> to vector<1x96xf32>
    %9 = vector.broadcast %8 : vector<1x96xf32> to vector<16x96xf32>
    %10 = arith.addf %6, %9 : vector<16x96xf32>
    %11 = vector.extract_strided_slice %10 {offsets = [0, 0], sizes = [16, 16], strides = [1, 1]} : vector<16x96xf32> to vector<16x16xf32>
    %12 = vector.extract_strided_slice %10 {offsets = [0, 32], sizes = [16, 16], strides = [1, 1]} : vector<16x96xf32> to vector<16x16xf32>
    %13 = vector.extract_strided_slice %10 {offsets = [0, 64], sizes = [16, 16], strides = [1, 1]} : vector<16x96xf32> to vector<16x16xf32>
    %cst_11 = arith.constant dense<0.000000e+00> : vector<16x16xf32>
    %14 = tpu.matmul %11, %12, %cst_11 {dimension_numbers = #tpu.dot_dimension_numbers<[1], [1], [0], [0], [0, 0, 1, 0], [], []>} : vector<16x16xf32>, vector<16x16xf32>, vector<16x16xf32> -> vector<16x16xf32>
    %cst_12 = arith.constant 2.500000e-01 : f32
    %15 = vector.broadcast %cst_12 : f32 to vector<16x16xf32>
    %16 = arith.mulf %14, %15 : vector<16x16xf32>
    %17 = arith.addf %16, %3 : vector<16x16xf32>
    %cst_13 = arith.constant dense<0xFF800000> : vector<16xf32>
    %18 = vector.multi_reduction <maximumf>, %17, %cst_13 [1] : vector<16x16xf32> to vector<16xf32>
    %19 = vector.shape_cast %18 : vector<16xf32> to vector<16x1xf32>
    %20 = vector.broadcast %19 : vector<16x1xf32> to vector<16x16xf32>
    %21 = arith.subf %17, %20 : vector<16x16xf32>
    %22 = math.exp %21 : vector<16x16xf32>
    %cst_14 = arith.constant dense<0.000000e+00> : vector<16xf32>
    %23 = vector.multi_reduction <add>, %22, %cst_14 [1] : vector<16x16xf32> to vector<16xf32>
    %24 = vector.shape_cast %23 : vector<16xf32> to vector<16x1xf32>
    %25 = tpu.reciprocal %24 {approx = true} : vector<16x1xf32> -> vector<16x1xf32>
    %26 = vector.broadcast %25 : vector<16x1xf32> to vector<16x16xf32>
    %27 = arith.mulf %22, %26 : vector<16x16xf32>
    %cst_15 = arith.constant dense<0.000000e+00> : vector<16x16xf32>
    %28 = tpu.matmul %27, %13, %cst_15 {dimension_numbers = #tpu.dot_dimension_numbers<[1], [0], [0], [1], [0, 0, 1, 1], [], []>} : vector<16x16xf32>, vector<16x16xf32>, vector<16x16xf32> -> vector<16x16xf32>
    %29 = vector.extract_strided_slice %10 {offsets = [0, 16], sizes = [16, 16], strides = [1, 1]} : vector<16x96xf32> to vector<16x16xf32>
    %30 = vector.extract_strided_slice %10 {offsets = [0, 48], sizes = [16, 16], strides = [1, 1]} : vector<16x96xf32> to vector<16x16xf32>
    %31 = vector.extract_strided_slice %10 {offsets = [0, 80], sizes = [16, 16], strides = [1, 1]} : vector<16x96xf32> to vector<16x16xf32>
    %cst_16 = arith.constant dense<0.000000e+00> : vector<16x16xf32>
    %32 = tpu.matmul %29, %30, %cst_16 {dimension_numbers = #tpu.dot_dimension_numbers<[1], [1], [0], [0], [0, 0, 1, 0], [], []>} : vector<16x16xf32>, vector<16x16xf32>, vector<16x16xf32> -> vector<16x16xf32>
    %cst_17 = arith.constant 2.500000e-01 : f32
    %33 = vector.broadcast %cst_17 : f32 to vector<16x16xf32>
    %34 = arith.mulf %32, %33 : vector<16x16xf32>
    %35 = arith.addf %34, %3 : vector<16x16xf32>
    %cst_18 = arith.constant dense<0xFF800000> : vector<16xf32>
    %36 = vector.multi_reduction <maximumf>, %35, %cst_18 [1] : vector<16x16xf32> to vector<16xf32>
    %37 = vector.shape_cast %36 : vector<16xf32> to vector<16x1xf32>
    %38 = vector.broadcast %37 : vector<16x1xf32> to vector<16x16xf32>
    %39 = arith.subf %35, %38 : vector<16x16xf32>
    %40 = math.exp %39 : vector<16x16xf32>
    %cst_19 = arith.constant dense<0.000000e+00> : vector<16xf32>
    %41 = vector.multi_reduction <add>, %40, %cst_19 [1] : vector<16x16xf32> to vector<16xf32>
    %42 = vector.shape_cast %41 : vector<16xf32> to vector<16x1xf32>
    %43 = tpu.reciprocal %42 {approx = true} : vector<16x1xf32> -> vector<16x1xf32>
    %44 = vector.broadcast %43 : vector<16x1xf32> to vector<16x16xf32>
    %45 = arith.mulf %40, %44 : vector<16x16xf32>
    %cst_20 = arith.constant dense<0.000000e+00> : vector<16x16xf32>
    %46 = tpu.matmul %45, %31, %cst_20 {dimension_numbers = #tpu.dot_dimension_numbers<[1], [0], [0], [1], [0, 0, 1, 1], [], []>} : vector<16x16xf32>, vector<16x16xf32>, vector<16x16xf32> -> vector<16x16xf32>
    %47 = tpu.concatenate %28, %46 in 1 : vector<16x16xf32>, vector<16x16xf32> -> vector<16x32xf32>
    %c0_21 = arith.constant 0 : index
    %c0_22 = arith.constant 0 : index
    %c0_23 = arith.constant 0 : index
    %48 = vector.load %arg5[%c0_21, %c0_22, %c0_23] : memref<2x32x32xf32, #tpu.memory_space<vmem>>, vector<1x32x32xf32>
    %49 = vector.shape_cast %48 : vector<1x32x32xf32> to vector<32x32xf32>
    %cst_24 = arith.constant dense<0.000000e+00> : vector<16x32xf32>
    %50 = tpu.matmul %47, %49, %cst_24 {dimension_numbers = #tpu.dot_dimension_numbers<[1], [0], [0], [1], [0, 0, 1, 1], [], []>} : vector<16x32xf32>, vector<32x32xf32>, vector<16x32xf32> -> vector<16x32xf32>
    %c0_25 = arith.constant 0 : index
    %c0_26 = arith.constant 0 : index
    %c0_27 = arith.constant 0 : index
    %51 = vector.load %arg6[%c0_25, %c0_26, %c0_27] : memref<2x1x32xf32, #tpu.memory_space<vmem>>, vector<1x1x32xf32>
    %52 = vector.shape_cast %51 : vector<1x1x32xf32> to vector<1x32xf32>
    %53 = vector.broadcast %52 : vector<1x32xf32> to vector<16x32xf32>
    %54 = arith.addf %50, %53 : vector<16x32xf32>
    %55 = arith.addf %2, %54 : vector<16x32xf32>
    %cst_28 = arith.constant dense<0.000000e+00> : vector<16xf32>
    %56 = vector.multi_reduction <add>, %55, %cst_28 [1] : vector<16x32xf32> to vector<16xf32>
    %57 = vector.shape_cast %56 : vector<16xf32> to vector<16x1xf32>
    %cst_29 = arith.constant 3.200000e+01 : f32
    %58 = vector.broadcast %cst_29 : f32 to vector<16x1xf32>
    %59 = arith.divf %57, %58 : vector<16x1xf32>
    %60 = vector.broadcast %59 : vector<16x1xf32> to vector<16x32xf32>
    %61 = arith.subf %55, %60 : vector<16x32xf32>
    %62 = arith.mulf %61, %61 : vector<16x32xf32>
    %cst_30 = arith.constant dense<0.000000e+00> : vector<16xf32>
    %63 = vector.multi_reduction <add>, %62, %cst_30 [1] : vector<16x32xf32> to vector<16xf32>
    %64 = vector.shape_cast %63 : vector<16xf32> to vector<16x1xf32>
    %cst_31 = arith.constant 3.200000e+01 : f32
    %65 = vector.broadcast %cst_31 : f32 to vector<16x1xf32>
    %66 = arith.divf %64, %65 : vector<16x1xf32>
    %67 = vector.broadcast %59 : vector<16x1xf32> to vector<16x32xf32>
    %68 = arith.subf %55, %67 : vector<16x32xf32>
    %cst_32 = arith.constant 9.99999974E-6 : f32
    %69 = vector.broadcast %cst_32 : f32 to vector<16x1xf32>
    %70 = arith.addf %66, %69 : vector<16x1xf32>
    %71 = math.rsqrt %70 : vector<16x1xf32>
    %72 = vector.broadcast %71 : vector<16x1xf32> to vector<16x32xf32>
    %73 = arith.mulf %68, %72 : vector<16x32xf32>
    %c0_33 = arith.constant 0 : index
    %c0_34 = arith.constant 0 : index
    %c0_35 = arith.constant 0 : index
    %74 = vector.load %arg7[%c0_33, %c0_34, %c0_35] : memref<2x1x32xf32, #tpu.memory_space<vmem>>, vector<1x1x32xf32>
    %75 = vector.shape_cast %74 : vector<1x1x32xf32> to vector<1x32xf32>
    %76 = vector.broadcast %75 : vector<1x32xf32> to vector<16x32xf32>
    %77 = arith.mulf %73, %76 : vector<16x32xf32>
    %c0_36 = arith.constant 0 : index
    %c0_37 = arith.constant 0 : index
    %c0_38 = arith.constant 0 : index
    %78 = vector.load %arg8[%c0_36, %c0_37, %c0_38] : memref<2x1x32xf32, #tpu.memory_space<vmem>>, vector<1x1x32xf32>
    %79 = vector.shape_cast %78 : vector<1x1x32xf32> to vector<1x32xf32>
    %80 = vector.broadcast %79 : vector<1x32xf32> to vector<16x32xf32>
    %81 = arith.addf %77, %80 : vector<16x32xf32>
    %c0_39 = arith.constant 0 : index
    %c0_40 = arith.constant 0 : index
    %c0_41 = arith.constant 0 : index
    %82 = vector.load %arg9[%c0_39, %c0_40, %c0_41] : memref<2x32x200xf32, #tpu.memory_space<vmem>>, vector<1x32x200xf32>
    %83 = vector.shape_cast %82 : vector<1x32x200xf32> to vector<32x200xf32>
    %cst_42 = arith.constant dense<0.000000e+00> : vector<16x200xf32>
    %84 = tpu.matmul %81, %83, %cst_42 {dimension_numbers = #tpu.dot_dimension_numbers<[1], [0], [0], [1], [0, 0, 1, 1], [], []>} : vector<16x32xf32>, vector<32x200xf32>, vector<16x200xf32> -> vector<16x200xf32>
    %c0_43 = arith.constant 0 : index
    %c0_44 = arith.constant 0 : index
    %c0_45 = arith.constant 0 : index
    %85 = vector.load %arg10[%c0_43, %c0_44, %c0_45] : memref<2x1x200xf32, #tpu.memory_space<vmem>>, vector<1x1x200xf32>
    %86 = vector.shape_cast %85 : vector<1x1x200xf32> to vector<1x200xf32>
    %87 = vector.broadcast %86 : vector<1x200xf32> to vector<16x200xf32>
    %88 = arith.addf %84, %87 : vector<16x200xf32>
    %cst_46 = arith.constant 0.000000e+00 : f32
    %89 = vector.broadcast %cst_46 : f32 to vector<16x200xf32>
    %90 = arith.maximumf %88, %89 : vector<16x200xf32>
    %c0_47 = arith.constant 0 : index
    %c0_48 = arith.constant 0 : index
    %c0_49 = arith.constant 0 : index
    %91 = vector.load %arg11[%c0_47, %c0_48, %c0_49] : memref<2x200x32xf32, #tpu.memory_space<vmem>>, vector<1x200x32xf32>
    %92 = vector.shape_cast %91 : vector<1x200x32xf32> to vector<200x32xf32>
    %cst_50 = arith.constant dense<0.000000e+00> : vector<16x32xf32>
    %93 = tpu.matmul %90, %92, %cst_50 {dimension_numbers = #tpu.dot_dimension_numbers<[1], [0], [0], [1], [0, 0, 1, 1], [], []>} : vector<16x200xf32>, vector<200x32xf32>, vector<16x32xf32> -> vector<16x32xf32>
    %c0_51 = arith.constant 0 : index
    %c0_52 = arith.constant 0 : index
    %c0_53 = arith.constant 0 : index
    %94 = vector.load %arg12[%c0_51, %c0_52, %c0_53] : memref<2x1x32xf32, #tpu.memory_space<vmem>>, vector<1x1x32xf32>
    %95 = vector.shape_cast %94 : vector<1x1x32xf32> to vector<1x32xf32>
    %96 = vector.broadcast %95 : vector<1x32xf32> to vector<16x32xf32>
    %97 = arith.addf %93, %96 : vector<16x32xf32>
    %98 = arith.addf %81, %97 : vector<16x32xf32>
    %cst_54 = arith.constant dense<0.000000e+00> : vector<16xf32>
    %99 = vector.multi_reduction <add>, %98, %cst_54 [1] : vector<16x32xf32> to vector<16xf32>
    %100 = vector.shape_cast %99 : vector<16xf32> to vector<16x1xf32>
    %cst_55 = arith.constant 3.200000e+01 : f32
    %101 = vector.broadcast %cst_55 : f32 to vector<16x1xf32>
    %102 = arith.divf %100, %101 : vector<16x1xf32>
    %103 = vector.broadcast %102 : vector<16x1xf32> to vector<16x32xf32>
    %104 = arith.subf %98, %103 : vector<16x32xf32>
    %105 = arith.mulf %104, %104 : vector<16x32xf32>
    %cst_56 = arith.constant dense<0.000000e+00> : vector<16xf32>
    %106 = vector.multi_reduction <add>, %105, %cst_56 [1] : vector<16x32xf32> to vector<16xf32>
    %107 = vector.shape_cast %106 : vector<16xf32> to vector<16x1xf32>
    %cst_57 = arith.constant 3.200000e+01 : f32
    %108 = vector.broadcast %cst_57 : f32 to vector<16x1xf32>
    %109 = arith.divf %107, %108 : vector<16x1xf32>
    %110 = vector.broadcast %102 : vector<16x1xf32> to vector<16x32xf32>
    %111 = arith.subf %98, %110 : vector<16x32xf32>
    %cst_58 = arith.constant 9.99999974E-6 : f32
    %112 = vector.broadcast %cst_58 : f32 to vector<16x1xf32>
    %113 = arith.addf %109, %112 : vector<16x1xf32>
    %114 = math.rsqrt %113 : vector<16x1xf32>
    %115 = vector.broadcast %114 : vector<16x1xf32> to vector<16x32xf32>
    %116 = arith.mulf %111, %115 : vector<16x32xf32>
    %c0_59 = arith.constant 0 : index
    %c0_60 = arith.constant 0 : index
    %c0_61 = arith.constant 0 : index
    %117 = vector.load %arg13[%c0_59, %c0_60, %c0_61] : memref<2x1x32xf32, #tpu.memory_space<vmem>>, vector<1x1x32xf32>
    %118 = vector.shape_cast %117 : vector<1x1x32xf32> to vector<1x32xf32>
    %119 = vector.broadcast %118 : vector<1x32xf32> to vector<16x32xf32>
    %120 = arith.mulf %116, %119 : vector<16x32xf32>
    %c0_62 = arith.constant 0 : index
    %c0_63 = arith.constant 0 : index
    %c0_64 = arith.constant 0 : index
    %121 = vector.load %arg14[%c0_62, %c0_63, %c0_64] : memref<2x1x32xf32, #tpu.memory_space<vmem>>, vector<1x1x32xf32>
    %122 = vector.shape_cast %121 : vector<1x1x32xf32> to vector<1x32xf32>
    %123 = vector.broadcast %122 : vector<1x32xf32> to vector<16x32xf32>
    %124 = arith.addf %120, %123 : vector<16x32xf32>
    %c1 = arith.constant 1 : index
    %c0_65 = arith.constant 0 : index
    %c0_66 = arith.constant 0 : index
    %125 = vector.load %arg3[%c1, %c0_65, %c0_66] : memref<2x32x96xf32, #tpu.memory_space<vmem>>, vector<1x32x96xf32>
    %126 = vector.shape_cast %125 : vector<1x32x96xf32> to vector<32x96xf32>
    %cst_67 = arith.constant dense<0.000000e+00> : vector<16x96xf32>
    %127 = tpu.matmul %124, %126, %cst_67 {dimension_numbers = #tpu.dot_dimension_numbers<[1], [0], [0], [1], [0, 0, 1, 1], [], []>} : vector<16x32xf32>, vector<32x96xf32>, vector<16x96xf32> -> vector<16x96xf32>
    %c1_68 = arith.constant 1 : index
    %c0_69 = arith.constant 0 : index
    %c0_70 = arith.constant 0 : index
    %128 = vector.load %arg4[%c1_68, %c0_69, %c0_70] : memref<2x1x96xf32, #tpu.memory_space<vmem>>, vector<1x1x96xf32>
    %129 = vector.shape_cast %128 : vector<1x1x96xf32> to vector<1x96xf32>
    %130 = vector.broadcast %129 : vector<1x96xf32> to vector<16x96xf32>
    %131 = arith.addf %127, %130 : vector<16x96xf32>
    %132 = vector.extract_strided_slice %131 {offsets = [0, 0], sizes = [16, 16], strides = [1, 1]} : vector<16x96xf32> to vector<16x16xf32>
    %133 = vector.extract_strided_slice %131 {offsets = [0, 32], sizes = [16, 16], strides = [1, 1]} : vector<16x96xf32> to vector<16x16xf32>
    %134 = vector.extract_strided_slice %131 {offsets = [0, 64], sizes = [16, 16], strides = [1, 1]} : vector<16x96xf32> to vector<16x16xf32>
    %cst_71 = arith.constant dense<0.000000e+00> : vector<16x16xf32>
    %135 = tpu.matmul %132, %133, %cst_71 {dimension_numbers = #tpu.dot_dimension_numbers<[1], [1], [0], [0], [0, 0, 1, 0], [], []>} : vector<16x16xf32>, vector<16x16xf32>, vector<16x16xf32> -> vector<16x16xf32>
    %cst_72 = arith.constant 2.500000e-01 : f32
    %136 = vector.broadcast %cst_72 : f32 to vector<16x16xf32>
    %137 = arith.mulf %135, %136 : vector<16x16xf32>
    %138 = arith.addf %137, %3 : vector<16x16xf32>
    %cst_73 = arith.constant dense<0xFF800000> : vector<16xf32>
    %139 = vector.multi_reduction <maximumf>, %138, %cst_73 [1] : vector<16x16xf32> to vector<16xf32>
    %140 = vector.shape_cast %139 : vector<16xf32> to vector<16x1xf32>
    %141 = vector.broadcast %140 : vector<16x1xf32> to vector<16x16xf32>
    %142 = arith.subf %138, %141 : vector<16x16xf32>
    %143 = math.exp %142 : vector<16x16xf32>
    %cst_74 = arith.constant dense<0.000000e+00> : vector<16xf32>
    %144 = vector.multi_reduction <add>, %143, %cst_74 [1] : vector<16x16xf32> to vector<16xf32>
    %145 = vector.shape_cast %144 : vector<16xf32> to vector<16x1xf32>
    %146 = tpu.reciprocal %145 {approx = true} : vector<16x1xf32> -> vector<16x1xf32>
    %147 = vector.broadcast %146 : vector<16x1xf32> to vector<16x16xf32>
    %148 = arith.mulf %143, %147 : vector<16x16xf32>
    %cst_75 = arith.constant dense<0.000000e+00> : vector<16x16xf32>
    %149 = tpu.matmul %148, %134, %cst_75 {dimension_numbers = #tpu.dot_dimension_numbers<[1], [0], [0], [1], [0, 0, 1, 1], [], []>} : vector<16x16xf32>, vector<16x16xf32>, vector<16x16xf32> -> vector<16x16xf32>
    %150 = vector.extract_strided_slice %131 {offsets = [0, 16], sizes = [16, 16], strides = [1, 1]} : vector<16x96xf32> to vector<16x16xf32>
    %151 = vector.extract_strided_slice %131 {offsets = [0, 48], sizes = [16, 16], strides = [1, 1]} : vector<16x96xf32> to vector<16x16xf32>
    %152 = vector.extract_strided_slice %131 {offsets = [0, 80], sizes = [16, 16], strides = [1, 1]} : vector<16x96xf32> to vector<16x16xf32>
    %cst_76 = arith.constant dense<0.000000e+00> : vector<16x16xf32>
    %153 = tpu.matmul %150, %151, %cst_76 {dimension_numbers = #tpu.dot_dimension_numbers<[1], [1], [0], [0], [0, 0, 1, 0], [], []>} : vector<16x16xf32>, vector<16x16xf32>, vector<16x16xf32> -> vector<16x16xf32>
    %cst_77 = arith.constant 2.500000e-01 : f32
    %154 = vector.broadcast %cst_77 : f32 to vector<16x16xf32>
    %155 = arith.mulf %153, %154 : vector<16x16xf32>
    %156 = arith.addf %155, %3 : vector<16x16xf32>
    %cst_78 = arith.constant dense<0xFF800000> : vector<16xf32>
    %157 = vector.multi_reduction <maximumf>, %156, %cst_78 [1] : vector<16x16xf32> to vector<16xf32>
    %158 = vector.shape_cast %157 : vector<16xf32> to vector<16x1xf32>
    %159 = vector.broadcast %158 : vector<16x1xf32> to vector<16x16xf32>
    %160 = arith.subf %156, %159 : vector<16x16xf32>
    %161 = math.exp %160 : vector<16x16xf32>
    %cst_79 = arith.constant dense<0.000000e+00> : vector<16xf32>
    %162 = vector.multi_reduction <add>, %161, %cst_79 [1] : vector<16x16xf32> to vector<16xf32>
    %163 = vector.shape_cast %162 : vector<16xf32> to vector<16x1xf32>
    %164 = tpu.reciprocal %163 {approx = true} : vector<16x1xf32> -> vector<16x1xf32>
    %165 = vector.broadcast %164 : vector<16x1xf32> to vector<16x16xf32>
    %166 = arith.mulf %161, %165 : vector<16x16xf32>
    %cst_80 = arith.constant dense<0.000000e+00> : vector<16x16xf32>
    %167 = tpu.matmul %166, %152, %cst_80 {dimension_numbers = #tpu.dot_dimension_numbers<[1], [0], [0], [1], [0, 0, 1, 1], [], []>} : vector<16x16xf32>, vector<16x16xf32>, vector<16x16xf32> -> vector<16x16xf32>
    %168 = tpu.concatenate %149, %167 in 1 : vector<16x16xf32>, vector<16x16xf32> -> vector<16x32xf32>
    %c1_81 = arith.constant 1 : index
    %c0_82 = arith.constant 0 : index
    %c0_83 = arith.constant 0 : index
    %169 = vector.load %arg5[%c1_81, %c0_82, %c0_83] : memref<2x32x32xf32, #tpu.memory_space<vmem>>, vector<1x32x32xf32>
    %170 = vector.shape_cast %169 : vector<1x32x32xf32> to vector<32x32xf32>
    %cst_84 = arith.constant dense<0.000000e+00> : vector<16x32xf32>
    %171 = tpu.matmul %168, %170, %cst_84 {dimension_numbers = #tpu.dot_dimension_numbers<[1], [0], [0], [1], [0, 0, 1, 1], [], []>} : vector<16x32xf32>, vector<32x32xf32>, vector<16x32xf32> -> vector<16x32xf32>
    %c1_85 = arith.constant 1 : index
    %c0_86 = arith.constant 0 : index
    %c0_87 = arith.constant 0 : index
    %172 = vector.load %arg6[%c1_85, %c0_86, %c0_87] : memref<2x1x32xf32, #tpu.memory_space<vmem>>, vector<1x1x32xf32>
    %173 = vector.shape_cast %172 : vector<1x1x32xf32> to vector<1x32xf32>
    %174 = vector.broadcast %173 : vector<1x32xf32> to vector<16x32xf32>
    %175 = arith.addf %171, %174 : vector<16x32xf32>
    %176 = arith.addf %124, %175 : vector<16x32xf32>
    %cst_88 = arith.constant dense<0.000000e+00> : vector<16xf32>
    %177 = vector.multi_reduction <add>, %176, %cst_88 [1] : vector<16x32xf32> to vector<16xf32>
    %178 = vector.shape_cast %177 : vector<16xf32> to vector<16x1xf32>
    %cst_89 = arith.constant 3.200000e+01 : f32
    %179 = vector.broadcast %cst_89 : f32 to vector<16x1xf32>
    %180 = arith.divf %178, %179 : vector<16x1xf32>
    %181 = vector.broadcast %180 : vector<16x1xf32> to vector<16x32xf32>
    %182 = arith.subf %176, %181 : vector<16x32xf32>
    %183 = arith.mulf %182, %182 : vector<16x32xf32>
    %cst_90 = arith.constant dense<0.000000e+00> : vector<16xf32>
    %184 = vector.multi_reduction <add>, %183, %cst_90 [1] : vector<16x32xf32> to vector<16xf32>
    %185 = vector.shape_cast %184 : vector<16xf32> to vector<16x1xf32>
    %cst_91 = arith.constant 3.200000e+01 : f32
    %186 = vector.broadcast %cst_91 : f32 to vector<16x1xf32>
    %187 = arith.divf %185, %186 : vector<16x1xf32>
    %188 = vector.broadcast %180 : vector<16x1xf32> to vector<16x32xf32>
    %189 = arith.subf %176, %188 : vector<16x32xf32>
    %cst_92 = arith.constant 9.99999974E-6 : f32
    %190 = vector.broadcast %cst_92 : f32 to vector<16x1xf32>
    %191 = arith.addf %187, %190 : vector<16x1xf32>
    %192 = math.rsqrt %191 : vector<16x1xf32>
    %193 = vector.broadcast %192 : vector<16x1xf32> to vector<16x32xf32>
    %194 = arith.mulf %189, %193 : vector<16x32xf32>
    %c1_93 = arith.constant 1 : index
    %c0_94 = arith.constant 0 : index
    %c0_95 = arith.constant 0 : index
    %195 = vector.load %arg7[%c1_93, %c0_94, %c0_95] : memref<2x1x32xf32, #tpu.memory_space<vmem>>, vector<1x1x32xf32>
    %196 = vector.shape_cast %195 : vector<1x1x32xf32> to vector<1x32xf32>
    %197 = vector.broadcast %196 : vector<1x32xf32> to vector<16x32xf32>
    %198 = arith.mulf %194, %197 : vector<16x32xf32>
    %c1_96 = arith.constant 1 : index
    %c0_97 = arith.constant 0 : index
    %c0_98 = arith.constant 0 : index
    %199 = vector.load %arg8[%c1_96, %c0_97, %c0_98] : memref<2x1x32xf32, #tpu.memory_space<vmem>>, vector<1x1x32xf32>
    %200 = vector.shape_cast %199 : vector<1x1x32xf32> to vector<1x32xf32>
    %201 = vector.broadcast %200 : vector<1x32xf32> to vector<16x32xf32>
    %202 = arith.addf %198, %201 : vector<16x32xf32>
    %c1_99 = arith.constant 1 : index
    %c0_100 = arith.constant 0 : index
    %c0_101 = arith.constant 0 : index
    %203 = vector.load %arg9[%c1_99, %c0_100, %c0_101] : memref<2x32x200xf32, #tpu.memory_space<vmem>>, vector<1x32x200xf32>
    %204 = vector.shape_cast %203 : vector<1x32x200xf32> to vector<32x200xf32>
    %cst_102 = arith.constant dense<0.000000e+00> : vector<16x200xf32>
    %205 = tpu.matmul %202, %204, %cst_102 {dimension_numbers = #tpu.dot_dimension_numbers<[1], [0], [0], [1], [0, 0, 1, 1], [], []>} : vector<16x32xf32>, vector<32x200xf32>, vector<16x200xf32> -> vector<16x200xf32>
    %c1_103 = arith.constant 1 : index
    %c0_104 = arith.constant 0 : index
    %c0_105 = arith.constant 0 : index
    %206 = vector.load %arg10[%c1_103, %c0_104, %c0_105] : memref<2x1x200xf32, #tpu.memory_space<vmem>>, vector<1x1x200xf32>
    %207 = vector.shape_cast %206 : vector<1x1x200xf32> to vector<1x200xf32>
    %208 = vector.broadcast %207 : vector<1x200xf32> to vector<16x200xf32>
    %209 = arith.addf %205, %208 : vector<16x200xf32>
    %cst_106 = arith.constant 0.000000e+00 : f32
    %210 = vector.broadcast %cst_106 : f32 to vector<16x200xf32>
    %211 = arith.maximumf %209, %210 : vector<16x200xf32>
    %c1_107 = arith.constant 1 : index
    %c0_108 = arith.constant 0 : index
    %c0_109 = arith.constant 0 : index
    %212 = vector.load %arg11[%c1_107, %c0_108, %c0_109] : memref<2x200x32xf32, #tpu.memory_space<vmem>>, vector<1x200x32xf32>
    %213 = vector.shape_cast %212 : vector<1x200x32xf32> to vector<200x32xf32>
    %cst_110 = arith.constant dense<0.000000e+00> : vector<16x32xf32>
    %214 = tpu.matmul %211, %213, %cst_110 {dimension_numbers = #tpu.dot_dimension_numbers<[1], [0], [0], [1], [0, 0, 1, 1], [], []>} : vector<16x200xf32>, vector<200x32xf32>, vector<16x32xf32> -> vector<16x32xf32>
    %c1_111 = arith.constant 1 : index
    %c0_112 = arith.constant 0 : index
    %c0_113 = arith.constant 0 : index
    %215 = vector.load %arg12[%c1_111, %c0_112, %c0_113] : memref<2x1x32xf32, #tpu.memory_space<vmem>>, vector<1x1x32xf32>
    %216 = vector.shape_cast %215 : vector<1x1x32xf32> to vector<1x32xf32>
    %217 = vector.broadcast %216 : vector<1x32xf32> to vector<16x32xf32>
    %218 = arith.addf %214, %217 : vector<16x32xf32>
    %219 = arith.addf %202, %218 : vector<16x32xf32>
    %cst_114 = arith.constant dense<0.000000e+00> : vector<16xf32>
    %220 = vector.multi_reduction <add>, %219, %cst_114 [1] : vector<16x32xf32> to vector<16xf32>
    %221 = vector.shape_cast %220 : vector<16xf32> to vector<16x1xf32>
    %cst_115 = arith.constant 3.200000e+01 : f32
    %222 = vector.broadcast %cst_115 : f32 to vector<16x1xf32>
    %223 = arith.divf %221, %222 : vector<16x1xf32>
    %224 = vector.broadcast %223 : vector<16x1xf32> to vector<16x32xf32>
    %225 = arith.subf %219, %224 : vector<16x32xf32>
    %226 = arith.mulf %225, %225 : vector<16x32xf32>
    %cst_116 = arith.constant dense<0.000000e+00> : vector<16xf32>
    %227 = vector.multi_reduction <add>, %226, %cst_116 [1] : vector<16x32xf32> to vector<16xf32>
    %228 = vector.shape_cast %227 : vector<16xf32> to vector<16x1xf32>
    %cst_117 = arith.constant 3.200000e+01 : f32
    %229 = vector.broadcast %cst_117 : f32 to vector<16x1xf32>
    %230 = arith.divf %228, %229 : vector<16x1xf32>
    %231 = vector.broadcast %223 : vector<16x1xf32> to vector<16x32xf32>
    %232 = arith.subf %219, %231 : vector<16x32xf32>
    %cst_118 = arith.constant 9.99999974E-6 : f32
    %233 = vector.broadcast %cst_118 : f32 to vector<16x1xf32>
    %234 = arith.addf %230, %233 : vector<16x1xf32>
    %235 = math.rsqrt %234 : vector<16x1xf32>
    %236 = vector.broadcast %235 : vector<16x1xf32> to vector<16x32xf32>
    %237 = arith.mulf %232, %236 : vector<16x32xf32>
    %c1_119 = arith.constant 1 : index
    %c0_120 = arith.constant 0 : index
    %c0_121 = arith.constant 0 : index
    %238 = vector.load %arg13[%c1_119, %c0_120, %c0_121] : memref<2x1x32xf32, #tpu.memory_space<vmem>>, vector<1x1x32xf32>
    %239 = vector.shape_cast %238 : vector<1x1x32xf32> to vector<1x32xf32>
    %240 = vector.broadcast %239 : vector<1x32xf32> to vector<16x32xf32>
    %241 = arith.mulf %237, %240 : vector<16x32xf32>
    %c1_122 = arith.constant 1 : index
    %c0_123 = arith.constant 0 : index
    %c0_124 = arith.constant 0 : index
    %242 = vector.load %arg14[%c1_122, %c0_123, %c0_124] : memref<2x1x32xf32, #tpu.memory_space<vmem>>, vector<1x1x32xf32>
    %243 = vector.shape_cast %242 : vector<1x1x32xf32> to vector<1x32xf32>
    %244 = vector.broadcast %243 : vector<1x32xf32> to vector<16x32xf32>
    %245 = arith.addf %241, %244 : vector<16x32xf32>
    %c0_125 = arith.constant 0 : index
    %c0_126 = arith.constant 0 : index
    %246 = vector.load %arg15[%c0_125, %c0_126] : memref<32x128xf32, #tpu.memory_space<vmem>>, vector<32x128xf32>
    %cst_127 = arith.constant dense<0.000000e+00> : vector<16x128xf32>
    %247 = tpu.matmul %245, %246, %cst_127 {dimension_numbers = #tpu.dot_dimension_numbers<[1], [0], [0], [1], [0, 0, 1, 1], [], []>} : vector<16x32xf32>, vector<32x128xf32>, vector<16x128xf32> -> vector<16x128xf32>
    %c0_128 = arith.constant 0 : index
    %c0_129 = arith.constant 0 : index
    %248 = vector.load %arg16[%c0_128, %c0_129] : memref<1x128xf32, #tpu.memory_space<vmem>>, vector<1x128xf32>
    %249 = vector.broadcast %248 : vector<1x128xf32> to vector<16x128xf32>
    %250 = arith.addf %247, %249 : vector<16x128xf32>
    %c0_130 = arith.constant 0 : index
    %c0_131 = arith.constant 0 : index
    %251 = vector.load %arg17[%c0_130, %c0_131] : memref<16x128xf32, #tpu.memory_space<vmem>>, vector<16x128xf32>
    tpu.vector_store %arg17[%c0_130, %c0_131], %250 {strides = array<i32>} : memref<16x128xf32, #tpu.memory_space<vmem>>, vector<16x128xf32>,
    return
  }
}

</mosaic_0001>

<bundles_post_ra>
// kernel: transformer_forward.1
= control target key start
LH: loop header
LB: loop body
LE: loop exit
PB: predicated region body
PF: predicated region fallthrough
CT: control target
= control target key end

     0   :  { %s2060_s0 = inlined_call_operand.vmem [shape: f32[16,32], index: 0, kind: input, shape index: {}]   ;;  %s2061_s1 = inlined_call_operand.vmem [shape: f32[16,32], index: 1, kind: input, shape index: {}]   ;;  %s2062_s2 = inlined_call_operand.vmem [shape: f32[16,16], index: 2, kind: input, shape index: {}]   ;;  %s2063_s3 = inlined_call_operand.vmem [shape: f32[2,32,96], index: 3, kind: input, shape index: {}]   ;;  %s2064_s4 = inlined_call_operand.vmem [shape: f32[2,1,96], index: 4, kind: input, shape index: {}]   ;;  %s2065_s5 = inlined_call_operand.vmem [shape: f32[2,32,32], index: 5, kind: input, shape index: {}]   ;;  %s2066_s6 = inlined_call_operand.vmem [shape: f32[2,1,32], index: 6, kind: input, shape index: {}]   ;;  %s2067_s7 = inlined_call_operand.vmem [shape: f32[2,1,32], index: 7, kind: input, shape index: {}, may-alias: {7,13}]   ;;  %s2068_s8 = inlined_call_operand.vmem [shape: f32[2,1,32], index: 8, kind: input, shape index: {}, may-alias: {8,14}]   ;;  %s2069_s9 = inlined_call_operand.vmem [shape: f32[2,32,200], index: 9, kind: input, shape index: {}]   ;;  %s2070_s10 = inlined_call_operand.vmem [shape: f32[2,1,200], index: 10, kind: input, shape index: {}]   ;;  %s2071_s11 = inlined_call_operand.vmem [shape: f32[2,200,32], index: 11, kind: input, shape index: {}]   ;;  %s2072_s12 = inlined_call_operand.vmem [shape: f32[2,1,32], index: 12, kind: input, shape index: {}]   ;;  %s2073_s13 = inlined_call_operand.vmem [shape: f32[2,1,32], index: 13, kind: input, shape index: {}, may-alias: {7,13}]   ;;  %s2074_s14 = inlined_call_operand.vmem [shape: f32[2,1,32], index: 14, kind: input, shape index: {}, may-alias: {8,14}]   ;;  %s2075_s15 = inlined_call_operand.vmem [shape: f32[32,128], index: 15, kind: input, shape index: {}]   ;;  %s2076_s16 = inlined_call_operand.vmem [shape: f32[1,128], index: 16, kind: input, shape index: {}]   ;;  %s2077_s17 = inlined_call_operand.hbm [shape: f32[16,128], index: 17, kind: output, shape index: {}]  }
   0x1   :  { %2080 = sst [smem:[#allocation5_spill]] %s2060_s0 }
   0x2   :  { %2081 = sst [smem:[#allocation6_spill]] %s2061_s1 }
   0x3   :  { %v68_v0 = vld [vmem:[%s2063_s3 + $0x18] sm:$0xff]  ;;  %v67_v1 = vld [vmem:[%s2063_s3 + $0x10] sm:$0xff]  ;;  %v66_v2 = vld [vmem:[%s2063_s3 + $0x8] sm:$0xff]  ;;  %s2082_s18 = sld [smem:[#allocation5_spill]]  ;;  %vm73_vm0 = vcmask 261120  }
   0x4   :  { %92 = vmatpush.msra.mxu0 %v68_v0  ;;  %1337 = vmatpush.msra.mxu3 %v68_v0  ;;  %s2083_s20 = sld [smem:[#allocation6_spill]]  ;;  %v65_v7 = vld [vmem:[%s2063_s3] sm:$0xff] }
   0x6   :  { %93 = vmatpush.msra.mxu0 %v67_v1  ;;  %1338 = vmatpush.msra.mxu3 %v67_v1 }
   0x8   :  { %94 = vmatpush.msra.mxu0 %v66_v2  ;;  %1339 = vmatpush.msra.mxu3 %v66_v2 }
   0x9   :  { %v57_v3 = vld [vmem:[%s2082_s18] sm:$0xff]  ;;  %v58_v5 = vld [vmem:[%s2082_s18 + $0x8] sm:$0xff] }
   0xa   :  { %v59_v4 = vld [vmem:[%s2083_s20] sm:$0xff]  ;;  %v60_v6 = vld [vmem:[%s2083_s20 + $0x8] sm:$0xff]  ;;  %95 = vmatpush.msra.mxu0 %v65_v7  ;;  %1340 = vmatpush.msra.mxu3 %v65_v7 }
   0xb   :  { %v1586_v8 = vadd.f32 %v59_v4, %v57_v3  ;;  %v1588_v9 = vadd.f32 %v60_v6, %v58_v5 }
   0xd   :  { %1242 = vmatmul.msk.f32.vlgmr.msra.gmra.mxu0 %vm73_vm0, %v1586_v8  ;;  %1243 = vmatmul.msk.f32.vlgmr.msra.gmra.mxu3 %vm73_vm0, %v1588_v9 }
   0xe   :  { %22 = vsyncpa [#allocation3], 0  ;;  %v1371_v10 = vld [vmem:[%s2064_s4] ss:$0 sm:$0xff]  ;;  %s1462_s29 = smov 112   ;;  %s1463_s0 = smov 80  }
   0xf   :  { %s1464_s30 = smov 96   ;;  %vm109_vm1 = vcmask 130048   ;;  %v1614_v22 = vld [vmem:[%s2062_s2] sm:$0xff]  ;;  %v1621_v29 = vld [vmem:[%s2062_s2 + $0x8] sm:$0xff]  ;;  %s1465_s2 = smov 64   ;;  %vm513_vm9 = vcmask 588800  }
  0x10   :  { %s1466_s21 = smov 48   ;;  %s1467_s28 = smov 16  }
  0x11   :  { %s1230_s20 = sshll.u32 %s2077_s17, 4  ;;  %s1231_s20 = int_to_ptr.hbm [resolvable:$true] %s1230_s20 }
  0x8a   :  { %v97_v11 = vpop.f32.mrf.mxu0 }
  0x8b   :  { %v98_v12 = vadd.f32 %v1371_v10, %v97_v11 }
  0x8d   :  { %202 = vrot.lane.b32.xlu2 %v98_v12, %s1462_s29 }
  0x90   :  { %v100_v13 = vpop.f32.mrf.mxu3 }
  0x91   :  { %v101_v14 = vadd.f32 %v1371_v10, %v100_v13 }
  0x93   :  { %208 = vrot.lane.b32.xlu1 %v101_v14, %s1463_s0  ;;  %107 = vrot.lane.b32.xlu0 %v101_v14, %s1464_s30  ;;  %v1351_v39 = vpack.i.bf16 %v98_v12, %v101_v14 }
  0x95   :  { %204 = vrot.lane.b32.xlu2 %v101_v14, %s1462_s29 }
  0x9b   :  { %206 = vrot.lane.b32.xlu1 %v98_v12, %s1463_s0  ;;  %105 = vrot.lane.b32.xlu0 %v98_v12, %s1464_s30 }
  0xe7   :  { %v203_v19 = vpop.permute.xlu2 %202 }
  0xef   :  { %v205_v20 = vpop.permute.xlu2 %204 }
 0x105   :  { %v209_v15 = vpop.permute.xlu1 %208  ;;  %v108_v16 = vpop.permute.xlu0 %107 }
 0x106   :  { %1244 = vmatpush.xpose.msk.msra.mxu1 %vm109_vm1, %v108_v16  ;;  %1250 = vmatpush.xpose.msk.msrb.mxu3 %vm109_vm1, %v209_v15  ;;  %v315_v16 = vld [vmem:[%s2065_s5 + $0x18] sm:$0xff] }
 0x107   :  { %338 = vmatpush.msrb.mxu0 %v315_v16  ;;  %v494_v16 = vld [vmem:[%s2071_s11 + $0x50] sm:$0xff] }
 0x10d   :  { %v207_v17 = vpop.permute.xlu1 %206  ;;  %v106_v18 = vpop.permute.xlu0 %105 }
 0x10e   :  { %1245 = vmatpush.xpose.msk.msra.mxu1 %vm109_vm1, %v106_v18  ;;  %1251 = vmatpush.xpose.msk.msrb.mxu3 %vm109_vm1, %v207_v17  ;;  %v314_v17 = vld [vmem:[%s2065_s5 + $0x10] sm:$0xff]  ;;  %v313_v18 = vld [vmem:[%s2065_s5 + $0x8] sm:$0xff] }
 0x10f   :  { %339 = vmatpush.msrb.mxu0 %v314_v17 }
 0x111   :  { %1246 = vmatmul.msk.f32.vlgmr.msra.gmra.mxu1 %vm109_vm1, %v98_v12  ;;  %1252 = vmatmul.msk.f32.vlgmr.msrb.gmra.mxu3 %vm109_vm1, %v203_v19 }
 0x112   :  { %340 = vmatpush.msrb.mxu0 %v313_v18  ;;  %v493_v18 = vld [vmem:[%s2071_s11 + $0x48] sm:$0xff] }
 0x119   :  { %1247 = vmatmul.msk.f32.gmra.mxu1 %vm109_vm1, %v101_v14  ;;  %1253 = vmatmul.msk.f32.gmra.mxu3 %vm109_vm1, %v205_v20 }
 0x18e   :  { %v135_v21 = vpop.f32.mrf.mxu1 }
 0x18f   :  { %v141_v23 = vmul.f32 0.25, %v135_v21 }
 0x191   :  { %v143_v24 = vadd.f32 %v141_v23, %v1614_v22 }
 0x193   :  { %v145_v25 = vsel %vm109_vm1, %v143_v24, -inf }
 0x194   :  { %v235_v26 = vpop.f32.mrf.mxu3  ;;  %146 = vmax.xlane.f32.xlu0 %v145_v25 }
 0x195   :  { %v241_v27 = vmul.f32 0.25, %v235_v26 }
 0x196   :  { %v138_v28 = vpop.f32.mrf.mxu1 }
 0x197   :  { %v142_v30 = vmul.f32 0.25, %v138_v28  ;;  %v243_v31 = vadd.f32 %v241_v27, %v1614_v22 }
 0x199   :  { %v245_v32 = vsel %vm109_vm1, %v243_v31, -inf  ;;  %v144_v33 = vadd.f32 %v142_v30, %v1621_v29  ;;  %v1372_v30 = vld [vmem:[%s2066_s6] ss:$0 sm:$0xff] }
 0x19a   :  { %246 = vmax.xlane.f32.xlu2 %v245_v32 }
 0x19b   :  { %v148_v34 = vsel %vm109_vm1, %v144_v33, -inf }
 0x19c   :  { %v238_v35 = vpop.f32.mrf.mxu3  ;;  %149 = vmax.xlane.f32.xlu1 %v148_v34 }
 0x19d   :  { %v242_v36 = vmul.f32 0.25, %v238_v35 }
 0x19f   :  { %v244_v37 = vadd.f32 %v242_v36, %v1621_v29 }
 0x1a1   :  { %v248_v38 = vsel %vm109_vm1, %v244_v37, -inf }
 0x1a2   :  { %249 = vmax.xlane.f32.xlu2 %v248_v38 }
 0x1b5   :  { %1352 = vrot.lane.b32.xlu1 %v1351_v39, %s1465_s2 }
 0x207   :  { %v147_v40 = vpop.xlane.xlu0 %146 }
 0x208   :  { %v151_v41 = vsub.f32 %v143_v24, %v147_v40  ;;  %v312_v24 = vld [vmem:[%s2065_s5] sm:$0xff] }
 0x209   :  { %341 = vmatpush.msrb.mxu0 %v312_v24  ;;  %v491_v24 = vld [vmem:[%s2071_s11 + $0x38] sm:$0xff] }
 0x20a   :  { %v153_v42 = vmul.f32 1.442695, %v151_v41 }
 0x20c   :  { %1386 = vpow2.f32 %v153_v42 }
 0x20d   :  { %v247_v43 = vpop.xlane.xlu2 %246 }
 0x20e   :  { %v251_v44 = vsub.f32 %v243_v31, %v247_v43 }
 0x20f   :  { %v150_v45 = vpop.xlane.xlu1 %149 }
 0x210   :  { %v253_v46 = vmul.f32 1.442695, %v251_v44  ;;  %v152_v47 = vsub.f32 %v144_v33, %v150_v45 }
 0x212   :  { %v1387_v48 = vpop.eup %1386  ;;  %1388 = vpow2.f32 %v253_v46  ;;  %v155_v49 = vmul.f32 1.442695, %v152_v47 }
 0x213   :  { %v157_v50 = vsel %vm109_vm1, %v1387_v48, 0.0 }
 0x214   :  { %1390 = vpow2.f32 %v155_v49  ;;  %158 = vadd.xlane.f32.xlu0 %v157_v50 }
 0x215   :  { %v250_v51 = vpop.xlane.xlu2 %249 }
 0x216   :  { %v252_v52 = vsub.f32 %v244_v37, %v250_v51 }
 0x218   :  { %v1389_v53 = vpop.eup %1388  ;;  %v255_v54 = vmul.f32 1.442695, %v252_v52 }
 0x219   :  { %v257_v56 = vsel %vm109_vm1, %v1389_v53, 0.0 }
 0x21a   :  { %v1391_v55 = vpop.eup %1390  ;;  %1392 = vpow2.f32 %v255_v54  ;;  %v420_v54 = vld [vmem:[%s2069_s9 + $0x30] sm:$0xff] }
 0x21b   :  { %v160_v57 = vsel %vm109_vm1, %v1391_v55, 0.0  ;;  %446 = vmatpush.msrb.mxu1 %v420_v54  ;;  %v422_v54 = vld [vmem:[%s2070_s10] sm:$0x3] }
 0x21c   :  { %258 = vadd.xlane.f32.xlu0 %v257_v56  ;;  %161 = vadd.xlane.f32.xlu2 %v160_v57  ;;  %v418_v56 = vld [vmem:[%s2069_s9 + $0x20] sm:$0xff]  ;;  %v419_v57 = vld [vmem:[%s2069_s9 + $0x28] sm:$0xff] }
 0x21d   :  { %447 = vmatpush.msrb.mxu1 %v418_v56 }
 0x220   :  { %v1393_v58 = vpop.eup %1392 }
 0x221   :  { %v260_v59 = vsel %vm109_vm1, %v1393_v58, 0.0 }
 0x224   :  { %261 = vadd.xlane.f32.xlu0 %v260_v59  ;;  %v417_v59 = vld [vmem:[%s2069_s9 + $0x18] sm:$0xff] }
 0x227   :  { %v1353_v60 = vpop.permute.xlu1 %1352 }
 0x228   :  { %v1354_v61 = vunpack.i.l.bf16 %v1353_v60  ;;  %v1355_v62 = vunpack.i.h.bf16 %v1353_v60  ;;  %v414_v60 = vld [vmem:[%s2069_s9] sm:$0xff] }
 0x22a   :  { %193 = vmatpush.msra.mxu2 %v1354_v61  ;;  %v415_v61 = vld [vmem:[%s2069_s9 + $0x8] sm:$0xff] }
 0x22c   :  { %194 = vmatpush.msra.mxu2 %v1355_v62 }
 0x234   :  { %1357 = vrot.lane.b32.xlu2 %v1351_v39, %s1466_s21  ;;  %v1468_v39 = vmov 32.0  }
 0x287   :  { %v159_v63 = vpop.xlane.xlu0 %158 }
 0x288   :  { %1394 = vrcp.f32 %v159_v63 }
 0x28e   :  { %v1395_v0 = vpop.eup %1394 }
 0x28f   :  { %v162_v1 = vpop.xlane.xlu2 %161  ;;  %v165_v2 = vmul.f32 %v1395_v0, %v1387_v48  ;;  %v259_v3 = vpop.xlane.xlu0 %258 }
 0x290   :  { %1396 = vrcp.f32 %v162_v1  ;;  %v499_v1 = vld [vmem:[%s2071_s11 + $0x78] sm:$0xff] }
 0x291   :  { %1248 = vmatmul.msk.f32.vlgmr.msra.gmra.mxu2 %vm109_vm1, %v165_v2  ;;  %1398 = vrcp.f32 %v259_v3  ;;  %v498_v2 = vld [vmem:[%s2071_s11 + $0x70] sm:$0xff]  ;;  %v497_v3 = vld [vmem:[%s2071_s11 + $0x68] sm:$0xff] }
 0x296   :  { %v1397_v4 = vpop.eup %1396 }
 0x297   :  { %v1358_v5 = vpop.permute.xlu2 %1357  ;;  %v166_v6 = vmul.f32 %v1397_v4, %v1391_v55  ;;  %v262_v11 = vpop.xlane.xlu0 %261  ;;  %v421_v55 = vld [vmem:[%s2069_s9 + $0x38] sm:$0xff] }
 0x298   :  { %v1359_v7 = vunpack.i.l.bf16 %v1358_v5  ;;  %v1360_v10 = vunpack.i.h.bf16 %v1358_v5  ;;  %v1399_v12 = vpop.eup %1398  ;;  %1400 = vrcp.f32 %v262_v11  ;;  %469 = vmatpush.msra.mxu3 %v421_v55  ;;  %v508_v5 = vld [vmem:[%s2071_s11 + $0xc0] sm:$0xff]  ;;  %v506_v11 = vld [vmem:[%s2071_s11 + $0xb0] sm:$0xff]  ;;  %v424_v55 = vperm.slane %v422_v54, 0 }
 0x299   :  { %1249 = vmatmul.msk.f32.gmra.mxu2 %vm109_vm1, %v166_v6  ;;  %v265_v13 = vmul.f32 %v1399_v12, %v1389_v53  ;;  %1402 = vrcp.f32 %v1468_v39  ;;  %550 = vmatpush.msra.mxu0 %v508_v5  ;;  %v1375_v5 = vld [vmem:[%s2072_s12] ss:$0 sm:$0xff] }
 0x29a   :  { %293 = vmatpush.msrb.mxu2 %v1359_v7  ;;  %470 = vmatpush.msra.mxu3 %v419_v57  ;;  %v496_v7 = vld [vmem:[%s2071_s11 + $0x60] sm:$0xff] }
 0x29c   :  { %294 = vmatpush.msrb.mxu2 %v1360_v10  ;;  %471 = vmatpush.msra.mxu3 %v417_v59  ;;  %v507_v10 = vld [vmem:[%s2071_s11 + $0xb8] sm:$0xff]  ;;  %v425_v59 = vperm.slane %v422_v54, 1 }
 0x29d   :  { %551 = vmatpush.msra.mxu0 %v507_v10 }
 0x29e   :  { %v1401_v14 = vpop.eup %1400  ;;  %472 = vmatpush.msra.mxu3 %v415_v61  ;;  %520 = vmatpush.msra.mxu2 %v499_v1 }
 0x29f   :  { %v266_v15 = vmul.f32 %v1401_v14, %v1393_v58  ;;  %v1403_v40 = vpop.eup %1402  ;;  %v416_v58 = vld [vmem:[%s2069_s9 + $0x10] sm:$0xff]  ;;  %v495_v14 = vld [vmem:[%s2071_s11 + $0x58] sm:$0xff]  ;;  %552 = vmatpush.msra.mxu0 %v506_v11 }
 0x2a0   :  { %v358_v41 = vmul.f32 32.0, %v1403_v40  ;;  %vm362_vm2 = vweird.f32 %v1403_v40  ;;  %448 = vmatpush.msrb.mxu1 %v416_v58  ;;  %521 = vmatpush.msra.mxu2 %v498_v2 }
 0x2a1   :  { %1254 = vmatmul.msk.f32.vlgmr.msrb.gmra.mxu2 %vm109_vm1, %v265_v13 }
 0x2a2   :  { %v359_v42 = vsub.f32 1.0, %v358_v41  ;;  %449 = vmatpush.msrb.mxu1 %v414_v60  ;;  %522 = vmatpush.msra.mxu2 %v497_v3 }
 0x2a4   :  { %v360_v43 = vmul.f32 %v1403_v40, %v359_v42  ;;  %523 = vmatpush.msra.mxu2 %v496_v7 }
 0x2a6   :  { %v361_v44 = vadd.f32 %v1403_v40, %v360_v43  ;;  %524 = vmatpush.msra.mxu2 %v495_v14 }
 0x2a8   :  { %v1664_v45 = vsel %vm362_vm2, %v1403_v40, %v361_v44  ;;  %525 = vmatpush.msra.mxu2 %v494_v16  ;;  %v487_v40 = vld [vmem:[%s2071_s11 + $0x18] sm:$0xff] }
 0x2a9   :  { %1255 = vmatmul.msk.f32.gmra.mxu2 %vm109_vm1, %v266_v15 }
 0x2aa   :  { %526 = vmatpush.msra.mxu2 %v493_v18 }
 0x314   :  { %v196_v19 = vpop.f32.mrf.mxu2 }
 0x31c   :  { %v199_v20 = vpop.f32.mrf.mxu2 }
 0x324   :  { %v296_v21 = vpop.f32.mrf.mxu2 }
 0x325   :  { %304 = vrot.lane.b32.xlu0 %v296_v21, %s1467_s28 }
 0x32c   :  { %v299_v23 = vpop.f32.mrf.mxu2 }
 0x32d   :  { %306 = vrot.lane.b32.xlu1 %v299_v23, %s1467_s28 }
 0x397   :  { %v305_v25 = vpop.permute.xlu0 %304 }
 0x398   :  { %v310_v26 = vsel %vm109_vm1, %v196_v19, %v305_v25 }
 0x399   :  { %1256 = vmatmul.msk.f32.vlgmr.msrb.gmra.mxu0 %vm73_vm0, %v310_v26 }
 0x39f   :  { %v307_v27 = vpop.permute.xlu1 %306 }
 0x3a0   :  { %v311_v28 = vsel %vm109_vm1, %v199_v20, %v307_v27  ;;  %v492_v20 = vld [vmem:[%s2071_s11 + $0x40] sm:$0xff] }
 0x3a1   :  { %1257 = vmatmul.msk.f32.gmra.mxu0 %vm73_vm0, %v311_v28  ;;  %527 = vmatpush.msra.mxu2 %v492_v20  ;;  %v1373_v27 = vld [vmem:[%s2067_s7] ss:$0 sm:$0xff]  ;;  %v490_v28 = vld [vmem:[%s2071_s11 + $0x30] sm:$0xff] }
 0x3a3   :  { %528 = vmatpush.msra.mxu2 %v491_v24 }
 0x3a5   :  { %529 = vmatpush.msra.mxu2 %v490_v28 }
 0x416   :  { %v343_v31 = vpop.f32.mrf.mxu0 }
 0x417   :  { %v344_v32 = vadd.f32 %v1372_v30, %v343_v31 }
 0x419   :  { %v349_v33 = vadd.f32 %v344_v32, %v1586_v8 }
 0x41b   :  { %v351_v34 = vsel %vm73_vm0, %v349_v33, 0.0 }
 0x41c   :  { %352 = vadd.xlane.f32.xlu1 %v351_v34  ;;  %v489_v34 = vld [vmem:[%s2071_s11 + $0x28] sm:$0xff] }
 0x41d   :  { %530 = vmatpush.msra.mxu2 %v489_v34  ;;  %v1265_v34 = vld [vmem:[%s2063_s3 + $0x28] sm:$0xff] }
 0x41e   :  { %v346_v35 = vpop.f32.mrf.mxu0 }
 0x41f   :  { %v347_v36 = vadd.f32 %v1372_v30, %v346_v35 }
 0x421   :  { %v350_v37 = vadd.f32 %v347_v36, %v1588_v9 }
 0x423   :  { %v354_v38 = vsel %vm73_vm0, %v350_v37, 0.0 }
 0x424   :  { %355 = vadd.xlane.f32.xlu2 %v354_v38 }
 0x48f   :  { %v353_v8 = vpop.xlane.xlu1 %352 }
 0x490   :  { %v364_v46 = vmul.f32 %v1664_v45, %v353_v8 }
 0x492   :  { %v1667_v47 = vsub.f32 %v349_v33, %v364_v46  ;;  %v1374_v33 = vld [vmem:[%s2068_s8] ss:$0 sm:$0xff]  ;;  %v486_v46 = vld [vmem:[%s2071_s11 + $0x10] sm:$0xff] }
 0x494   :  { %v368_v9 = vmul.f32 %v1667_v47, %v1667_v47 }
 0x496   :  { %v370_v48 = vsel %vm73_vm0, %v368_v9, 0.0  ;;  %v485_v9 = vld [vmem:[%s2071_s11 + $0x8] sm:$0xff] }
 0x497   :  { %v356_v49 = vpop.xlane.xlu2 %355  ;;  %371 = vadd.xlane.f32.xlu0 %v370_v48  ;;  %v504_v48 = vld [vmem:[%s2071_s11 + $0xa0] sm:$0xff] }
 0x498   :  { %v365_v50 = vmul.f32 %v1664_v45, %v356_v49  ;;  %v484_v49 = vld [vmem:[%s2071_s11] sm:$0xff] }
 0x49a   :  { %v1673_v51 = vsub.f32 %v350_v37, %v365_v50  ;;  %v488_v37 = vld [vmem:[%s2071_s11 + $0x20] sm:$0xff]  ;;  %v503_v50 = vld [vmem:[%s2071_s11 + $0x98] sm:$0xff] }
 0x49b   :  { %531 = vmatpush.msra.mxu2 %v488_v37 }
 0x49c   :  { %v369_v52 = vmul.f32 %v1673_v51, %v1673_v51 }
 0x49d   :  { %532 = vmatpush.msra.mxu2 %v487_v40 }
 0x49e   :  { %v373_v53 = vsel %vm73_vm0, %v369_v52, 0.0  ;;  %v501_v52 = vld [vmem:[%s2071_s11 + $0x88] sm:$0xff] }
 0x49f   :  { %374 = vadd.xlane.f32.xlu1 %v373_v53  ;;  %533 = vmatpush.msra.mxu2 %v486_v46  ;;  %v500_v53 = vld [vmem:[%s2071_s11 + $0x80] sm:$0xff] }
 0x4a1   :  { %534 = vmatpush.msra.mxu2 %v485_v9 }
 0x4a3   :  { %535 = vmatpush.msra.mxu2 %v484_v49  ;;  %v1376_v49 = vld [vmem:[%s2073_s13] ss:$0 sm:$0xff] }
 0x50a   :  { %v372_v62 = vpop.xlane.xlu0 %371 }
 0x50b   :  { %v376_v63 = vmul.f32 %v372_v62, %v1664_v45 }
 0x50d   :  { %v378_v0 = vadd.f32 1e-05, %v376_v63 }
 0x50f   :  { %1404 = vrsqrt.f32 %v378_v0  ;;  %vm386_vm4 = vweird.f32 %v378_v0 }
 0x512   :  { %v375_v4 = vpop.xlane.xlu1 %374 }
 0x513   :  { %v377_v6 = vmul.f32 %v375_v4, %v1664_v45 }
 0x515   :  { %v1405_v12 = vpop.eup %1404  ;;  %v379_v13 = vadd.f32 1e-05, %v377_v6 }
 0x516   :  { %v381_v15 = vmul.f32 %v1405_v12, %v378_v0  ;;  %vm387_vm3 = vweird.f32 %v1405_v12 }
 0x517   :  { %1406 = vrsqrt.f32 %v379_v13  ;;  %vm388_vm5 = vmor %vm386_vm4, %vm387_vm3  ;;  %vm396_vm7 = vweird.f32 %v379_v13 }
 0x518   :  { %v382_v17 = vmul.f32 %v1405_v12, %v381_v15 }
 0x51a   :  { %v383_v19 = vmul.f32 0.5, %v382_v17 }
 0x51c   :  { %v384_v21 = vsub.f32 1.5, %v383_v19 }
 0x51d   :  { %v1407_v23 = vpop.eup %1406 }
 0x51e   :  { %v385_v25 = vmul.f32 %v1405_v12, %v384_v21  ;;  %v391_v26 = vmul.f32 %v1407_v23, %v379_v13  ;;  %vm397_vm6 = vweird.f32 %v1407_v23 }
 0x51f   :  { %vm398_vm8 = vmor %vm396_vm7, %vm397_vm6 }
 0x520   :  { %v389_v30 = vsel %vm388_vm5, %v1405_v12, %v385_v25  ;;  %v392_v31 = vmul.f32 %v1407_v23, %v391_v26 }
 0x521   :  { %v400_v32 = vmul.f32 %v389_v30, %v1667_v47  ;;  %v505_v47 = vld [vmem:[%s2071_s11 + $0xa8] sm:$0xff] }
 0x522   :  { %v393_v35 = vmul.f32 0.5, %v392_v31  ;;  %553 = vmatpush.msra.mxu0 %v505_v47 }
 0x523   :  { %v406_v36 = vmul.f32 %v1373_v27, %v400_v32  ;;  %v1267_v32 = vld [vmem:[%s2063_s3 + $0x38] sm:$0xff] }
 0x524   :  { %v394_v38 = vsub.f32 1.5, %v393_v35  ;;  %554 = vmatpush.msra.mxu0 %v504_v48  ;;  %652 = vmatpush.msra.mxu1 %v1267_v32  ;;  %v1264_v35 = vld [vmem:[%s2063_s3 + $0x20] sm:$0xff] }
 0x525   :  { %v412_v39 = vadd.f32 %v1374_v33, %v406_v36 }
 0x526   :  { %v395_v41 = vmul.f32 %v1407_v23, %v394_v38  ;;  %555 = vmatpush.msra.mxu0 %v503_v50 }
 0x527   :  { %1258 = vmatmul.msk.f32.vlgmr.msrb.gmra.mxu1 %vm73_vm0, %v412_v39  ;;  %1260 = vmatmul.msk.f32.vlgmr.msra.gmra.mxu3 %vm73_vm0, %v412_v39 }
 0x528   :  { %v399_v42 = vsel %vm398_vm8, %v1407_v23, %v395_v41 }
 0x529   :  { %v401_v43 = vmul.f32 %v399_v42, %v1673_v51  ;;  %v502_v51 = vld [vmem:[%s2071_s11 + $0x90] sm:$0xff] }
 0x52a   :  { %556 = vmatpush.msra.mxu0 %v502_v51 }
 0x52b   :  { %v407_v44 = vmul.f32 %v1373_v27, %v401_v43 }
 0x52c   :  { %557 = vmatpush.msra.mxu0 %v501_v52 }
 0x52d   :  { %v413_v8 = vadd.f32 %v1374_v33, %v407_v44  ;;  %v1266_v33 = vld [vmem:[%s2063_s3 + $0x30] sm:$0xff] }
 0x52e   :  { %558 = vmatpush.msra.mxu0 %v500_v53  ;;  %653 = vmatpush.msra.mxu1 %v1266_v33  ;;  %v1377_v53 = vld [vmem:[%s2074_s14] ss:$0 sm:$0xff] }
 0x52f   :  { %1259 = vmatmul.msk.f32.gmra.mxu1 %vm73_vm0, %v413_v8  ;;  %1261 = vmatmul.msk.f32.gmra.mxu3 %vm73_vm0, %v413_v8 }
 0x530   :  { %654 = vmatpush.msra.mxu1 %v1265_v34 }
 0x532   :  { %655 = vmatpush.msra.mxu1 %v1264_v35 }
 0x5a4   :  { %v451_v56 = vpop.f32.mrf.mxu1 }
 0x5a5   :  { %v452_v57 = vadd.f32 %v451_v56, %v424_v55 }
 0x5a7   :  { %v480_v58 = vmax.f32 %v452_v57, 0.0 }
 0x5a9   :  { %536 = vmatmul.f32.vlgmr.msra.gmra.mxu2 %v480_v58 }
 0x5aa   :  { %v474_v60 = vpop.f32.mrf.mxu3 }
 0x5ab   :  { %v475_v61 = vadd.f32 %v474_v60, %v425_v59 }
 0x5ac   :  { %v454_v62 = vpop.f32.mrf.mxu1 }
 0x5ad   :  { %v481_v63 = vmax.f32 %v475_v61, 0.0  ;;  %v455_v0 = vadd.f32 %v454_v62, %v424_v55 }
 0x5af   :  { %v482_v1 = vmax.f32 %v455_v0, 0.0  ;;  %1262 = vmatmul.msk.f32.vlgmr.msra.gmra.mxu0 %vm513_vm9, %v481_v63  ;;  %v1378_v63 = vld [vmem:[%s2064_s4 + $0x1] ss:$0 sm:$0xff] }
 0x5b1   :  { %539 = vmatmul.f32.gmra.mxu2 %v482_v1 }
 0x5b2   :  { %v477_v2 = vpop.f32.mrf.mxu3 }
 0x5b3   :  { %v478_v3 = vadd.f32 %v477_v2, %v425_v59 }
 0x5b5   :  { %v483_v4 = vmax.f32 %v478_v3, 0.0 }
 0x5b7   :  { %1263 = vmatmul.msk.f32.gmra.mxu0 %vm513_vm9, %v483_v4 }
 0x62c   :  { %v537_v6 = vpop.f32.mrf.mxu2  ;;  %v560_v7 = vpop.f32.mrf.mxu0 }
 0x62d   :  { %v538_v10 = vadd.f32 %v1375_v5, %v537_v6 }
 0x62f   :  { %v561_v11 = vadd.f32 %v560_v7, %v538_v10 }
 0x631   :  { %v566_v12 = vadd.f32 %v561_v11, %v412_v39 }
 0x633   :  { %v568_v13 = vsel %vm73_vm0, %v566_v12, 0.0 }
 0x634   :  { %569 = vadd.xlane.f32.xlu2 %v568_v13  ;;  %v540_v14 = vpop.f32.mrf.mxu2  ;;  %v563_v16 = vpop.f32.mrf.mxu0 }
 0x635   :  { %v541_v15 = vadd.f32 %v1375_v5, %v540_v14 }
 0x637   :  { %v564_v17 = vadd.f32 %v563_v16, %v541_v15 }
 0x639   :  { %v567_v18 = vadd.f32 %v564_v17, %v413_v8 }
 0x63b   :  { %v571_v19 = vsel %vm73_vm0, %v567_v18, 0.0 }
 0x63c   :  { %572 = vadd.xlane.f32.xlu1 %v571_v19 }
 0x6a7   :  { %v570_v20 = vpop.xlane.xlu2 %569 }
 0x6a8   :  { %v574_v21 = vmul.f32 %v570_v20, %v1664_v45 }
 0x6aa   :  { %v576_v23 = vsub.f32 %v566_v12, %v574_v21 }
 0x6ac   :  { %v578_v24 = vmul.f32 %v576_v23, %v576_v23 }
 0x6ae   :  { %v580_v25 = vsel %vm73_vm0, %v578_v24, 0.0 }
 0x6af   :  { %581 = vadd.xlane.f32.xlu0 %v580_v25  ;;  %v573_v26 = vpop.xlane.xlu1 %572 }
 0x6b0   :  { %v575_v27 = vmul.f32 %v573_v26, %v1664_v45 }
 0x6b2   :  { %v577_v28 = vsub.f32 %v567_v18, %v575_v27 }
 0x6b4   :  { %v579_v30 = vmul.f32 %v577_v28, %v577_v28 }
 0x6b6   :  { %v583_v31 = vsel %vm73_vm0, %v579_v30, 0.0 }
 0x6b7   :  { %584 = vadd.xlane.f32.xlu2 %v583_v31 }
 0x722   :  { %v582_v36 = vpop.xlane.xlu0 %581 }
 0x723   :  { %v586_v37 = vmul.f32 %v582_v36, %v1664_v45 }
 0x725   :  { %v588_v38 = vadd.f32 1e-05, %v586_v37 }
 0x727   :  { %1408 = vrsqrt.f32 %v588_v38  ;;  %vm596_vm11 = vweird.f32 %v588_v38 }
 0x72a   :  { %v585_v39 = vpop.xlane.xlu2 %584 }
 0x72b   :  { %v587_v40 = vmul.f32 %v585_v39, %v1664_v45 }
 0x72d   :  { %v1409_v41 = vpop.eup %1408  ;;  %v589_v42 = vadd.f32 1e-05, %v587_v40 }
 0x72e   :  { %v591_v43 = vmul.f32 %v1409_v41, %v588_v38  ;;  %vm597_vm10 = vweird.f32 %v1409_v41 }
 0x72f   :  { %1410 = vrsqrt.f32 %v589_v42  ;;  %vm598_vm12 = vmor %vm596_vm11, %vm597_vm10  ;;  %vm606_vm14 = vweird.f32 %v589_v42 }
 0x730   :  { %v592_v44 = vmul.f32 %v1409_v41, %v591_v43 }
 0x732   :  { %v593_v8 = vmul.f32 0.5, %v592_v44 }
 0x734   :  { %v594_v46 = vsub.f32 1.5, %v593_v8 }
 0x735   :  { %v1411_v47 = vpop.eup %1410 }
 0x736   :  { %v595_v9 = vmul.f32 %v1409_v41, %v594_v46  ;;  %v601_v48 = vmul.f32 %v1411_v47, %v589_v42  ;;  %vm607_vm13 = vweird.f32 %v1411_v47 }
 0x737   :  { %vm608_vm15 = vmor %vm606_vm14, %vm607_vm13 }
 0x738   :  { %v599_v50 = vsel %vm598_vm12, %v1409_v41, %v595_v9  ;;  %v602_v51 = vmul.f32 %v1411_v47, %v601_v48 }
 0x739   :  { %v610_v52 = vmul.f32 %v599_v50, %v576_v23 }
 0x73a   :  { %v603_v54 = vmul.f32 0.5, %v602_v51 }
 0x73b   :  { %v616_v55 = vmul.f32 %v1376_v49, %v610_v52 }
 0x73c   :  { %v604_v56 = vsub.f32 1.5, %v603_v54 }
 0x73d   :  { %v1825_v57 = vadd.f32 %v1377_v53, %v616_v55 }
 0x73e   :  { %v605_v58 = vmul.f32 %v1411_v47, %v604_v56 }
 0x73f   :  { %1269 = vmatmul.msk.f32.vlgmr.msra.gmra.mxu1 %vm73_vm0, %v1825_v57 }
 0x740   :  { %v609_v59 = vsel %vm608_vm15, %v1411_v47, %v605_v58 }
 0x741   :  { %v611_v60 = vmul.f32 %v609_v59, %v577_v28 }
 0x743   :  { %v617_v61 = vmul.f32 %v1376_v49, %v611_v60 }
 0x745   :  { %v1829_v62 = vadd.f32 %v1377_v53, %v617_v61 }
 0x747   :  { %1270 = vmatmul.msk.f32.gmra.mxu1 %vm73_vm0, %v1829_v62 }
 0x7bc   :  { %v657_v0 = vpop.f32.mrf.mxu1 }
 0x7bd   :  { %v658_v1 = vadd.f32 %v1378_v63, %v657_v0 }
 0x7bf   :  { %665 = vrot.lane.b32.xlu0 %v658_v1, %s1464_s30 }
 0x7c4   :  { %v660_v2 = vpop.f32.mrf.mxu1 }
 0x7c5   :  { %v661_v3 = vadd.f32 %v1378_v63, %v660_v2 }
 0x7c7   :  { %765 = vrot.lane.b32.xlu0 %v658_v1, %s1463_s0  ;;  %767 = vrot.lane.b32.xlu2 %v661_v3, %s1463_s0  ;;  %v1361_v27 = vpack.i.bf16 %v658_v1, %v661_v3 }
 0x7c8   :  { %667 = vrot.lane.b32.xlu1 %v661_v3, %s1464_s30 }
 0x7cf   :  { %763 = vrot.lane.b32.xlu2 %v661_v3, %s1462_s29 }
 0x7d0   :  { %761 = vrot.lane.b32.xlu1 %v658_v1, %s1462_s29 }
 0x821   :  { %v768_v6 = vpop.permute.xlu2 %767 }
 0x829   :  { %v764_v11 = vpop.permute.xlu2 %763 }
 0x831   :  { %v666_v4 = vpop.permute.xlu0 %665 }
 0x839   :  { %v766_v7 = vpop.permute.xlu0 %765 }
 0x83a   :  { %v668_v5 = vpop.permute.xlu1 %667 }
 0x83b   :  { %1271 = vmatpush.xpose.msk.msrb.mxu3 %vm109_vm1, %v668_v5 }
 0x83f   :  { %1272 = vmatpush.xpose.msk.msrb.mxu3 %vm109_vm1, %v666_v4 }
 0x842   :  { %1273 = vmatmul.msk.f32.vlgmr.msrb.gmra.mxu3 %vm109_vm1, %v658_v1  ;;  %v762_v10 = vpop.permute.xlu1 %761 }
 0x843   :  { %1277 = vmatpush.xpose.msk.msra.mxu3 %vm109_vm1, %v768_v6  ;;  %v1286_v6 = vld [vmem:[%s2065_s5 + $0x38] sm:$0xff] }
 0x844   :  { %899 = vmatpush.msrb.mxu2 %v1286_v6  ;;  %v1380_v6 = vld [vmem:[%s2067_s7 + $0x1] ss:$0 sm:$0xff] }
 0x847   :  { %1278 = vmatpush.xpose.msk.msra.mxu3 %vm109_vm1, %v766_v7  ;;  %v1285_v7 = vld [vmem:[%s2065_s5 + $0x30] sm:$0xff] }
 0x848   :  { %900 = vmatpush.msrb.mxu2 %v1285_v7  ;;  %v1311_v7 = vld [vmem:[%s2071_s11 + $0xf8] sm:$0xff] }
 0x84a   :  { %1274 = vmatmul.msk.f32.gmra.mxu3 %vm109_vm1, %v661_v3 }
 0x852   :  { %1279 = vmatmul.msk.f32.vlgmr.msra.gmra.mxu3 %vm109_vm1, %v762_v10  ;;  %v1284_v10 = vld [vmem:[%s2065_s5 + $0x28] sm:$0xff] }
 0x853   :  { %901 = vmatpush.msrb.mxu2 %v1284_v10 }
 0x85a   :  { %1280 = vmatmul.msk.f32.gmra.mxu3 %vm109_vm1, %v764_v11  ;;  %v1283_v11 = vld [vmem:[%s2065_s5 + $0x20] sm:$0xff]  ;;  %s1470_s5 = smov 128  }
 0x85b   :  { %902 = vmatpush.msrb.mxu2 %v1283_v11 }
 0x8c5   :  { %v694_v12 = vpop.f32.mrf.mxu3 }
 0x8c6   :  { %v700_v13 = vmul.f32 0.25, %v694_v12 }
 0x8c8   :  { %v702_v14 = vadd.f32 %v700_v13, %v1614_v22 }
 0x8ca   :  { %v704_v15 = vsel %vm109_vm1, %v702_v14, -inf }
 0x8cb   :  { %705 = vmax.xlane.f32.xlu2 %v704_v15 }
 0x8cd   :  { %v697_v16 = vpop.f32.mrf.mxu3 }
 0x8ce   :  { %v701_v20 = vmul.f32 0.25, %v697_v16 }
 0x8d0   :  { %v703_v25 = vadd.f32 %v701_v20, %v1621_v29 }
 0x8d2   :  { %v707_v28 = vsel %vm109_vm1, %v703_v25, -inf }
 0x8d5   :  { %v794_v17 = vpop.f32.mrf.mxu3 }
 0x8d6   :  { %v800_v18 = vmul.f32 0.25, %v794_v17 }
 0x8d8   :  { %v802_v19 = vadd.f32 %v800_v18, %v1614_v22  ;;  %v1379_v18 = vld [vmem:[%s2066_s6 + $0x1] ss:$0 sm:$0xff]  ;;  %s1471_s6 = smov 8  }
 0x8da   :  { %v804_v21 = vsel %vm109_vm1, %v802_v19, -inf }
 0x8db   :  { %805 = vmax.xlane.f32.xlu0 %v804_v21 }
 0x8dd   :  { %v797_v23 = vpop.f32.mrf.mxu3 }
 0x8de   :  { %v801_v24 = vmul.f32 0.25, %v797_v23 }
 0x8e0   :  { %v803_v26 = vadd.f32 %v801_v24, %v1621_v29 }
 0x8e2   :  { %v807_v30 = vsel %vm109_vm1, %v803_v26, -inf }
 0x8e3   :  { %1362 = vrot.lane.b32.xlu2 %v1361_v27, %s1466_s21  ;;  %708 = vmax.xlane.f32.xlu0 %v707_v28 }
 0x8e4   :  { %808 = vmax.xlane.f32.xlu1 %v807_v30 }
 0x93e   :  { %v706_v22 = vpop.xlane.xlu2 %705 }
 0x93f   :  { %v710_v36 = vsub.f32 %v702_v14, %v706_v22 }
 0x941   :  { %v712_v29 = vmul.f32 1.442695, %v710_v36  ;;  %v1298_v36 = vld [vmem:[%s2069_s9 + $0x70] sm:$0xff] }
 0x946   :  { %v1363_v31 = vpop.permute.xlu2 %1362 }
 0x947   :  { %v1364_v32 = vunpack.i.l.bf16 %v1363_v31  ;;  %v1365_v33 = vunpack.i.h.bf16 %v1363_v31 }
 0x949   :  { %852 = vmatpush.msrb.mxu0 %v1364_v32 }
 0x94b   :  { %853 = vmatpush.msrb.mxu0 %v1365_v33 }
 0x94e   :  { %v806_v34 = vpop.xlane.xlu0 %805 }
 0x94f   :  { %v810_v35 = vsub.f32 %v802_v19, %v806_v34 }
 0x951   :  { %v812_v37 = vmul.f32 1.442695, %v810_v35 }
 0x953   :  { %1412 = vpow2.f32 %v812_v37  ;;  %v1299_v37 = vld [vmem:[%s2069_s9 + $0x78] sm:$0xff] }
 0x954   :  { %1414 = vpow2.f32 %v712_v29  ;;  %1027 = vmatpush.msrb.mxu3 %v1299_v37  ;;  %v1296_v29 = vld [vmem:[%s2069_s9 + $0x60] sm:$0xff] }
 0x956   :  { %v709_v38 = vpop.xlane.xlu0 %708 }
 0x957   :  { %v809_v39 = vpop.xlane.xlu1 %808  ;;  %v711_v42 = vsub.f32 %v703_v25, %v709_v38  ;;  %v1297_v38 = vld [vmem:[%s2069_s9 + $0x68] sm:$0xff] }
 0x958   :  { %v811_v40 = vsub.f32 %v803_v26, %v809_v39  ;;  %1028 = vmatpush.msrb.mxu3 %v1297_v38  ;;  %v1294_v39 = vld [vmem:[%s2069_s9 + $0x50] sm:$0xff] }
 0x959   :  { %v1413_v41 = vpop.eup %1412  ;;  %v714_v8 = vmul.f32 1.442695, %v711_v42  ;;  %v1293_v42 = vld [vmem:[%s2069_s9 + $0x48] sm:$0xff] }
 0x95a   :  { %v814_v43 = vmul.f32 1.442695, %v811_v40  ;;  %v816_v44 = vsel %vm109_vm1, %v1413_v41, 0.0  ;;  %v1415_v46 = vpop.eup %1414  ;;  %v1295_v40 = vld [vmem:[%s2069_s9 + $0x58] sm:$0xff] }
 0x95b   :  { %817 = vadd.xlane.f32.xlu1 %v816_v44  ;;  %v716_v9 = vsel %vm109_vm1, %v1415_v46, 0.0  ;;  %1029 = vmatpush.msrb.mxu3 %v1295_v40 }
 0x95c   :  { %1416 = vpow2.f32 %v814_v43 }
 0x95d   :  { %1418 = vpow2.f32 %v714_v8  ;;  %1030 = vmatpush.msrb.mxu3 %v1293_v42 }
 0x962   :  { %v1417_v47 = vpop.eup %1416 }
 0x963   :  { %717 = vadd.xlane.f32.xlu1 %v716_v9  ;;  %v819_v48 = vsel %vm109_vm1, %v1417_v47, 0.0  ;;  %v1419_v49 = vpop.eup %1418  ;;  %v1318_v9 = vld [vmem:[%s2071_s11 + $0x130] sm:$0xff] }
 0x964   :  { %820 = vadd.xlane.f32.xlu0 %v819_v48  ;;  %v719_v50 = vsel %vm109_vm1, %v1419_v49, 0.0 }
 0x96b   :  { %720 = vadd.xlane.f32.xlu1 %v719_v50 }
 0x978   :  { %1367 = vrot.lane.b32.xlu0 %v1361_v27, %s1465_s2 }
 0x9ce   :  { %v818_v51 = vpop.xlane.xlu1 %817 }
 0x9cf   :  { %1420 = vrcp.f32 %v818_v51  ;;  %v1317_v51 = vld [vmem:[%s2071_s11 + $0x128] sm:$0xff] }
 0x9d5   :  { %v1421_v52 = vpop.eup %1420 }
 0x9d6   :  { %v824_v53 = vmul.f32 %v1421_v52, %v1413_v41  ;;  %v718_v58 = vpop.xlane.xlu1 %717  ;;  %v1292_v41 = vld [vmem:[%s2069_s9 + $0x40] sm:$0xff] }
 0x9d7   :  { %v821_v54 = vpop.xlane.xlu0 %820  ;;  %v1328_v52 = vld [vmem:[%s2071_s11 + $0x180] sm:$0xff] }
 0x9d8   :  { %1422 = vrcp.f32 %v821_v54  ;;  %1281 = vmatmul.msk.f32.vlgmr.msrb.gmra.mxu0 %vm109_vm1, %v824_v53  ;;  %v1327_v53 = vld [vmem:[%s2071_s11 + $0x178] sm:$0xff] }
 0x9d9   :  { %1424 = vrcp.f32 %v718_v58 }
 0x9de   :  { %v1423_v55 = vpop.eup %1422  ;;  %v721_v59 = vpop.xlane.xlu1 %720 }
 0x9df   :  { %v825_v56 = vmul.f32 %v1423_v55, %v1417_v47  ;;  %v1425_v61 = vpop.eup %1424  ;;  %1426 = vrcp.f32 %v721_v59  ;;  %v1319_v47 = vld [vmem:[%s2071_s11 + $0x138] sm:$0xff] }
 0x9e0   :  { %v724_v1 = vmul.f32 %v1425_v61, %v1415_v46  ;;  %v1320_v46 = vld [vmem:[%s2071_s11 + $0x140] sm:$0xff]  ;;  %v1315_v59 = vld [vmem:[%s2071_s11 + $0x118] sm:$0xff]  ;;  %v1314_v61 = vld [vmem:[%s2071_s11 + $0x110] sm:$0xff] }
 0x9e1   :  { %1282 = vmatmul.msk.f32.gmra.mxu0 %vm109_vm1, %v825_v56  ;;  %v1316_v56 = vld [vmem:[%s2071_s11 + $0x120] sm:$0xff] }
 0x9e2   :  { %1079 = vmatpush.msra.mxu0 %v1320_v46 }
 0x9e4   :  { %1080 = vmatpush.msra.mxu0 %v1319_v47 }
 0x9e5   :  { %v1427_v2 = vpop.eup %1426 }
 0x9e6   :  { %v725_v3 = vmul.f32 %v1427_v2, %v1419_v49  ;;  %v1329_v49 = vld [vmem:[%s2071_s11 + $0x188] sm:$0xff]  ;;  %1081 = vmatpush.msra.mxu0 %v1318_v9 }
 0x9e7   :  { %1109 = vmatpush.msra.mxu2 %v1329_v49 }
 0x9e8   :  { %1082 = vmatpush.msra.mxu0 %v1317_v51 }
 0x9e9   :  { %1110 = vmatpush.msra.mxu2 %v1328_v52 }
 0x9ea   :  { %v1368_v60 = vpop.permute.xlu0 %1367  ;;  %1083 = vmatpush.msra.mxu0 %v1316_v56 }
 0x9eb   :  { %v1369_v63 = vunpack.i.l.bf16 %v1368_v60  ;;  %v1370_v0 = vunpack.i.h.bf16 %v1368_v60  ;;  %1111 = vmatpush.msra.mxu2 %v1327_v53 }
 0x9ec   :  { %1084 = vmatpush.msra.mxu0 %v1315_v59 }
 0x9ed   :  { %752 = vmatpush.msrb.mxu1 %v1369_v63 }
 0x9ee   :  { %1085 = vmatpush.msra.mxu0 %v1314_v61 }
 0x9ef   :  { %753 = vmatpush.msrb.mxu1 %v1370_v0  ;;  %v1313_v0 = vld [vmem:[%s2071_s11 + $0x108] sm:$0xff] }
 0x9f0   :  { %1275 = vmatmul.msk.f32.vlgmr.msrb.gmra.mxu1 %vm109_vm1, %v724_v1  ;;  %1086 = vmatpush.msra.mxu0 %v1313_v0 }
 0x9f1   :  { %1004 = vmatpush.msra.mxu1 %v1298_v36 }
 0x9f3   :  { %1005 = vmatpush.msra.mxu1 %v1296_v29 }
 0x9f5   :  { %1006 = vmatpush.msra.mxu1 %v1294_v39 }
 0x9f7   :  { %1007 = vmatpush.msra.mxu1 %v1292_v41 }
 0x9f8   :  { %1276 = vmatmul.msk.f32.gmra.mxu1 %vm109_vm1, %v725_v3  ;;  %v1312_v3 = vld [vmem:[%s2071_s11 + $0x100] sm:$0xff] }
 0x9f9   :  { %1087 = vmatpush.msra.mxu0 %v1312_v3 }
 0x9fb   :  { %1088 = vmatpush.msra.mxu0 %v1311_v7 }
 0xa55   :  { %v855_v4 = vpop.f32.mrf.mxu0 }
 0xa56   :  { %863 = vrot.lane.b32.xlu1 %v855_v4, %s1467_s28 }
 0xa5e   :  { %v858_v5 = vpop.f32.mrf.mxu0 }
 0xa5f   :  { %865 = vrot.lane.b32.xlu2 %v858_v5, %s1467_s28 }
 0xa6d   :  { %v755_v12 = vpop.f32.mrf.mxu1 }
 0xa75   :  { %v758_v16 = vpop.f32.mrf.mxu1 }
 0xab9   :  { %v866_v15 = vpop.permute.xlu2 %865 }
 0xaba   :  { %v870_v17 = vsel %vm109_vm1, %v758_v16, %v866_v15 }
 0xac8   :  { %v864_v13 = vpop.permute.xlu1 %863 }
 0xac9   :  { %v869_v14 = vsel %vm109_vm1, %v755_v12, %v864_v13  ;;  %v1381_v13 = vld [vmem:[%s2068_s8 + $0x1] ss:$0 sm:$0xff] }
 0xaca   :  { %1288 = vmatmul.msk.f32.vlgmr.msrb.gmra.mxu2 %vm73_vm0, %v869_v14  ;;  %v1310_v14 = vld [vmem:[%s2071_s11 + $0xf0] sm:$0xff] }
 0xacb   :  { %1089 = vmatpush.msra.mxu0 %v1310_v14 }
 0xad2   :  { %1289 = vmatmul.msk.f32.gmra.mxu2 %vm73_vm0, %v870_v17  ;;  %v1309_v17 = vld [vmem:[%s2071_s11 + $0xe8] sm:$0xff] }
 0xad3   :  { %1090 = vmatpush.msra.mxu0 %v1309_v17 }
 0xb4d   :  { %v904_v19 = vpop.f32.mrf.mxu2 }
 0xb4e   :  { %v905_v20 = vadd.f32 %v1379_v18, %v904_v19 }
 0xb50   :  { %v910_v21 = vadd.f32 %v905_v20, %v1825_v57  ;;  %v1308_v20 = vld [vmem:[%s2071_s11 + $0xe0] sm:$0xff] }
 0xb51   :  { %1091 = vmatpush.msra.mxu0 %v1308_v20 }
 0xb52   :  { %v912_v23 = vsel %vm73_vm0, %v910_v21, 0.0 }
 0xb53   :  { %913 = vadd.xlane.f32.xlu0 %v912_v23 }
 0xb55   :  { %v907_v24 = vpop.f32.mrf.mxu2 }
 0xb56   :  { %v908_v25 = vadd.f32 %v1379_v18, %v907_v24 }
 0xb58   :  { %v911_v26 = vadd.f32 %v908_v25, %v1829_v62 }
 0xb5a   :  { %v915_v27 = vsel %vm73_vm0, %v911_v26, 0.0 }
 0xb5b   :  { %916 = vadd.xlane.f32.xlu2 %v915_v27  ;;  %v1307_v27 = vld [vmem:[%s2071_s11 + $0xd8] sm:$0xff] }
 0xb5c   :  { %1092 = vmatpush.msra.mxu0 %v1307_v27 }
 0xbc6   :  { %v914_v28 = vpop.xlane.xlu0 %913 }
 0xbc7   :  { %v918_v30 = vmul.f32 %v914_v28, %v1664_v45  ;;  %v1326_v28 = vld [vmem:[%s2071_s11 + $0x170] sm:$0xff] }
 0xbc8   :  { %1112 = vmatpush.msra.mxu2 %v1326_v28 }
 0xbc9   :  { %v1894_v22 = vsub.f32 %v910_v21, %v918_v30  ;;  %v1306_v30 = vld [vmem:[%s2071_s11 + $0xd0] sm:$0xff] }
 0xbca   :  { %1093 = vmatpush.msra.mxu0 %v1306_v30  ;;  %v1383_v30 = vld [vmem:[%s2073_s13 + $0x1] ss:$0 sm:$0xff] }
 0xbcb   :  { %v922_v31 = vmul.f32 %v1894_v22, %v1894_v22 }
 0xbcd   :  { %v924_v57 = vsel %vm73_vm0, %v922_v31, 0.0  ;;  %v1305_v31 = vld [vmem:[%s2071_s11 + $0xc8] sm:$0xff] }
 0xbce   :  { %v917_v32 = vpop.xlane.xlu2 %916  ;;  %925 = vadd.xlane.f32.xlu1 %v924_v57  ;;  %v1324_v57 = vld [vmem:[%s2071_s11 + $0x160] sm:$0xff]  ;;  %1094 = vmatpush.msra.mxu0 %v1305_v31 }
 0xbcf   :  { %v919_v33 = vmul.f32 %v917_v32, %v1664_v45  ;;  %v1323_v32 = vld [vmem:[%s2071_s11 + $0x158] sm:$0xff] }
 0xbd1   :  { %v1900_v34 = vsub.f32 %v911_v26, %v919_v33  ;;  %v1322_v33 = vld [vmem:[%s2071_s11 + $0x150] sm:$0xff] }
 0xbd3   :  { %v923_v62 = vmul.f32 %v1900_v34, %v1900_v34 }
 0xbd5   :  { %v927_v35 = vsel %vm73_vm0, %v923_v62, 0.0  ;;  %v1300_v62 = vld [vmem:[%s2070_s10 + $0x2] sm:$0x3] }
 0xbd6   :  { %928 = vadd.xlane.f32.xlu0 %v927_v35  ;;  %v982_v35 = vperm.slane %v1300_v62, 0  ;;  %v983_v38 = vperm.slane %v1300_v62, 1 }
 0xc41   :  { %v926_v43 = vpop.xlane.xlu1 %925 }
 0xc42   :  { %v930_v44 = vmul.f32 %v926_v43, %v1664_v45 }
 0xc44   :  { %v932_v8 = vadd.f32 1e-05, %v930_v44 }
 0xc46   :  { %1428 = vrsqrt.f32 %v932_v8  ;;  %vm940_vm2 = vweird.f32 %v932_v8 }
 0xc49   :  { %v929_v48 = vpop.xlane.xlu0 %928 }
 0xc4a   :  { %v931_v50 = vmul.f32 %v929_v48, %v1664_v45  ;;  %v1382_v48 = vld [vmem:[%s2072_s12 + $0x1] ss:$0 sm:$0xff] }
 0xc4c   :  { %v1429_v54 = vpop.eup %1428  ;;  %v933_v55 = vadd.f32 1e-05, %v931_v50 }
 0xc4d   :  { %v935_v58 = vmul.f32 %v1429_v54, %v932_v8  ;;  %vm941_vm1 = vweird.f32 %v1429_v54 }
 0xc4e   :  { %1430 = vrsqrt.f32 %v933_v55  ;;  %vm942_vm3 = vmor %vm940_vm2, %vm941_vm1  ;;  %vm950_vm5 = vweird.f32 %v933_v55 }
 0xc4f   :  { %v936_v60 = vmul.f32 %v1429_v54, %v935_v58 }
 0xc51   :  { %v937_v63 = vmul.f32 0.5, %v936_v60 }
 0xc53   :  { %v938_v1 = vsub.f32 1.5, %v937_v63 }
 0xc54   :  { %v1431_v2 = vpop.eup %1430 }
 0xc55   :  { %v939_v4 = vmul.f32 %v1429_v54, %v938_v1  ;;  %v945_v5 = vmul.f32 %v1431_v2, %v933_v55  ;;  %vm951_vm4 = vweird.f32 %v1431_v2 }
 0xc56   :  { %vm952_vm6 = vmor %vm950_vm5, %vm951_vm4 }
 0xc57   :  { %v943_v10 = vsel %vm942_vm3, %v1429_v54, %v939_v4  ;;  %v946_v11 = vmul.f32 %v1431_v2, %v945_v5 }
 0xc58   :  { %v954_v12 = vmul.f32 %v943_v10, %v1894_v22  ;;  %v1325_v22 = vld [vmem:[%s2071_s11 + $0x168] sm:$0xff]  ;;  %v1188_v10 = vld [vmem:[%s2075_s15 + $0x18] sm:$0xff] }
 0xc59   :  { %v947_v15 = vmul.f32 0.5, %v946_v11  ;;  %1113 = vmatpush.msra.mxu2 %v1325_v22  ;;  %1211 = vmatpush.msrb.mxu1 %v1188_v10  ;;  %v1187_v11 = vld [vmem:[%s2075_s15 + $0x10] sm:$0xff] }
 0xc5a   :  { %v961_v16 = vmul.f32 %v1380_v6, %v954_v12  ;;  %v1186_v12 = vld [vmem:[%s2075_s15 + $0x8] sm:$0xff] }
 0xc5b   :  { %v948_v18 = vsub.f32 1.5, %v947_v15  ;;  %1114 = vmatpush.msra.mxu2 %v1324_v57  ;;  %1212 = vmatpush.msrb.mxu1 %v1187_v11  ;;  %v1384_v57 = vld [vmem:[%s2074_s14 + $0x1] ss:$0 sm:$0xff]  ;;  %s1469_s14 = smov [#allocation2]  }
 0xc5c   :  { %v968_v19 = vadd.f32 %v1381_v13, %v961_v16  ;;  %s1228_s19 = sshll.u32 %s1469_s14, 4  ;;  %s1229_s19 = int_to_ptr.vmem [resolvable:$true] %s1228_s19 }
 0xc5d   :  { %v949_v21 = vmul.f32 %v1431_v2, %v948_v18  ;;  %1115 = vmatpush.msra.mxu2 %v1323_v32  ;;  %1213 = vmatpush.msrb.mxu1 %v1186_v12 }
 0xc5e   :  { %1301 = vmatmul.msk.f32.vlgmr.msra.gmra.mxu1 %vm73_vm0, %v968_v19  ;;  %1303 = vmatmul.msk.f32.vlgmr.msrb.gmra.mxu3 %vm73_vm0, %v968_v19 }
 0xc5f   :  { %v953_v23 = vsel %vm952_vm6, %v1431_v2, %v949_v21  ;;  %1116 = vmatpush.msra.mxu2 %v1322_v33 }
 0xc60   :  { %v955_v24 = vmul.f32 %v953_v23, %v1900_v34  ;;  %v1321_v34 = vld [vmem:[%s2071_s11 + $0x148] sm:$0xff] }
 0xc61   :  { %1117 = vmatpush.msra.mxu2 %v1321_v34 }
 0xc62   :  { %v962_v25 = vmul.f32 %v1380_v6, %v955_v24 }
 0xc64   :  { %v969_v26 = vadd.f32 %v1381_v13, %v962_v25  ;;  %v1185_v13 = vld [vmem:[%s2075_s15] sm:$0xff] }
 0xc65   :  { %1214 = vmatpush.msrb.mxu1 %v1185_v13 }
 0xc66   :  { %1302 = vmatmul.msk.f32.gmra.mxu1 %vm73_vm0, %v969_v26  ;;  %1304 = vmatmul.msk.f32.gmra.mxu3 %vm73_vm0, %v969_v26 }
 0xcdb   :  { %v1009_v36 = vpop.f32.mrf.mxu1 }
 0xcdc   :  { %v1010_v37 = vadd.f32 %v1009_v36, %v982_v35 }
 0xcde   :  { %v1038_v29 = vmax.f32 %v1010_v37, 0.0 }
 0xce0   :  { %1095 = vmatmul.f32.vlgmr.msra.gmra.mxu0 %v1038_v29 }
 0xce1   :  { %v1032_v39 = vpop.f32.mrf.mxu3 }
 0xce2   :  { %v1033_v40 = vadd.f32 %v1032_v39, %v983_v38  ;;  %v1385_v39 = vld [vmem:[%s2076_s16] ss:$0 sm:$0xff] }
 0xce3   :  { %v1012_v41 = vpop.f32.mrf.mxu1 }
 0xce4   :  { %v1039_v42 = vmax.f32 %v1033_v40, 0.0  ;;  %v1013_v43 = vadd.f32 %v1012_v41, %v982_v35 }
 0xce6   :  { %v1040_v44 = vmax.f32 %v1013_v43, 0.0  ;;  %1331 = vmatmul.msk.f32.vlgmr.msra.gmra.mxu2 %vm513_vm9, %v1039_v42 }
 0xce8   :  { %1098 = vmatmul.f32.gmra.mxu0 %v1040_v44 }
 0xce9   :  { %v1035_v8 = vpop.f32.mrf.mxu3 }
 0xcea   :  { %v1036_v46 = vadd.f32 %v1035_v8, %v983_v38 }
 0xcec   :  { %v1041_v47 = vmax.f32 %v1036_v46, 0.0 }
 0xcee   :  { %1332 = vmatmul.msk.f32.gmra.mxu2 %vm513_vm9, %v1041_v47 }
 0xd5d   :  { %v1096_v9 = vpop.f32.mrf.mxu0 }
 0xd5e   :  { %v1097_v49 = vadd.f32 %v1382_v48, %v1096_v9 }
 0xd65   :  { %v1099_v53 = vpop.f32.mrf.mxu0 }
 0xd66   :  { %v1100_v55 = vadd.f32 %v1382_v48, %v1099_v53 }
 0xd69   :  { %v1119_v50 = vpop.f32.mrf.mxu2 }
 0xd6a   :  { %v1120_v51 = vadd.f32 %v1119_v50, %v1097_v49 }
 0xd6c   :  { %v1125_v52 = vadd.f32 %v1120_v51, %v968_v19 }
 0xd6e   :  { %v1127_v54 = vsel %vm73_vm0, %v1125_v52, 0.0 }
 0xd6f   :  { %1128 = vadd.xlane.f32.xlu2 %v1127_v54 }
 0xd71   :  { %v1122_v56 = vpop.f32.mrf.mxu2 }
 0xd72   :  { %v1123_v58 = vadd.f32 %v1122_v56, %v1100_v55 }
 0xd74   :  { %v1126_v59 = vadd.f32 %v1123_v58, %v969_v26 }
 0xd76   :  { %v1130_v60 = vsel %vm73_vm0, %v1126_v59, 0.0 }
 0xd77   :  { %1131 = vadd.xlane.f32.xlu0 %v1130_v60 }
 0xde2   :  { %v1129_v61 = vpop.xlane.xlu2 %1128 }
 0xde3   :  { %v1133_v63 = vmul.f32 %v1129_v61, %v1664_v45 }
 0xde5   :  { %v1135_v0 = vsub.f32 %v1125_v52, %v1133_v63 }
 0xde7   :  { %v1137_v1 = vmul.f32 %v1135_v0, %v1135_v0 }
 0xde9   :  { %v1139_v2 = vsel %vm73_vm0, %v1137_v1, 0.0 }
 0xdea   :  { %1140 = vadd.xlane.f32.xlu2 %v1139_v2  ;;  %v1132_v3 = vpop.xlane.xlu0 %1131 }
 0xdeb   :  { %v1134_v4 = vmul.f32 %v1132_v3, %v1664_v45 }
 0xded   :  { %v1136_v5 = vsub.f32 %v1126_v59, %v1134_v4 }
 0xdef   :  { %v1138_v6 = vmul.f32 %v1136_v5, %v1136_v5 }
 0xdf1   :  { %v1142_v7 = vsel %vm73_vm0, %v1138_v6, 0.0 }
 0xdf2   :  { %1143 = vadd.xlane.f32.xlu1 %v1142_v7 }
 0xe5d   :  { %v1141_v14 = vpop.xlane.xlu2 %1140 }
 0xe5e   :  { %v1145_v15 = vmul.f32 %v1141_v14, %v1664_v45 }
 0xe60   :  { %v1147_v16 = vadd.f32 1e-05, %v1145_v15 }
 0xe62   :  { %1432 = vrsqrt.f32 %v1147_v16  ;;  %vm1155_vm8 = vweird.f32 %v1147_v16 }
 0xe65   :  { %v1144_v17 = vpop.xlane.xlu1 %1143 }
 0xe66   :  { %v1146_v18 = vmul.f32 %v1144_v17, %v1664_v45 }
 0xe68   :  { %v1433_v19 = vpop.eup %1432  ;;  %v1148_v20 = vadd.f32 1e-05, %v1146_v18 }
 0xe69   :  { %v1150_v21 = vmul.f32 %v1433_v19, %v1147_v16  ;;  %vm1156_vm7 = vweird.f32 %v1433_v19 }
 0xe6a   :  { %1434 = vrsqrt.f32 %v1148_v20  ;;  %vm1157_vm9 = vmor %vm1155_vm8, %vm1156_vm7  ;;  %vm1165_vm11 = vweird.f32 %v1148_v20 }
 0xe6b   :  { %v1151_v23 = vmul.f32 %v1433_v19, %v1150_v21 }
 0xe6d   :  { %v1152_v24 = vmul.f32 0.5, %v1151_v23 }
 0xe6f   :  { %v1153_v25 = vsub.f32 1.5, %v1152_v24 }
 0xe70   :  { %v1435_v26 = vpop.eup %1434 }
 0xe71   :  { %v1154_v27 = vmul.f32 %v1433_v19, %v1153_v25  ;;  %v1160_v28 = vmul.f32 %v1435_v26, %v1148_v20  ;;  %vm1166_vm10 = vweird.f32 %v1435_v26 }
 0xe72   :  { %vm1167_vm12 = vmor %vm1165_vm11, %vm1166_vm10 }
 0xe73   :  { %v1158_v22 = vsel %vm1157_vm9, %v1433_v19, %v1154_v27  ;;  %v1161_v31 = vmul.f32 %v1435_v26, %v1160_v28 }
 0xe74   :  { %v1169_v45 = vmul.f32 %v1158_v22, %v1135_v0 }
 0xe75   :  { %v1162_v32 = vmul.f32 0.5, %v1161_v31 }
 0xe76   :  { %v1176_v33 = vmul.f32 %v1383_v30, %v1169_v45 }
 0xe77   :  { %v1163_v34 = vsub.f32 1.5, %v1162_v32 }
 0xe78   :  { %v1183_v62 = vadd.f32 %v1384_v57, %v1176_v33 }
 0xe79   :  { %v1164_v35 = vmul.f32 %v1435_v26, %v1163_v34 }
 0xe7a   :  { %1335 = vmatmul.msk.f32.vlgmr.msrb.gmra.mxu1 %vm73_vm0, %v1183_v62 }
 0xe7b   :  { %v1168_v36 = vsel %vm1167_vm12, %v1435_v26, %v1164_v35 }
 0xe7c   :  { %v1170_v37 = vmul.f32 %v1168_v36, %v1136_v5 }
 0xe7e   :  { %v1177_v29 = vmul.f32 %v1383_v30, %v1170_v37 }
 0xe80   :  { %v1184_v38 = vadd.f32 %v1384_v57, %v1177_v29 }
 0xe82   :  { %1336 = vmatmul.msk.f32.gmra.mxu1 %vm73_vm0, %v1184_v38 }
 0xef7   :  { %v1216_v40 = vpop.f32.mrf.mxu1 }
 0xef8   :  { %v1217_v41 = vadd.f32 %v1385_v39, %v1216_v40 }
 0xefa   :  { %1222 = vst [vmem:[#allocation2] sm:$0xff] %v1217_v41 }
 0xeff   :  { %v1219_v42 = vpop.f32.mrf.mxu1 }
 0xf00   :  { %v1220_v43 = vadd.f32 %v1385_v39, %v1219_v42 }
 0xf02   :  { %1223 = vst [vmem:[#allocation2 + $0x8] sm:$0xff] %v1220_v43 }
 0xf03   :  { %1236 = dma.vmem_to_hbm [thread:$0]  %s1229_s19, 256, %s1231_s20, [#allocation3], %s1470_s5, %s1470_s5, %s1471_s6  }
 0xf04   :  { %1460 = dma.done.wait [#allocation3], 256  }
 0xf05   :  { %1461 = vsyncadd [#allocation3], 4294967040 }
 0xf06   :  { %1241 = vsyncpa [#allocation3], 1 }

</bundles_post_ra>
